<compile_context>
chip_gen: v7x
topology: tpu7x:2x2x1
jax: 0.10.0
libtpu: 0.0.40
codegen_flags: <defaults>
</compile_context>

<pallas_src>
from collections import OrderedDict

import jax
import jax.numpy as jnp
from jax.experimental import pallas as pl
from jax.experimental.pallas import tpu as pltpu


MODALITIES = ("rgb", "depth")
OUT_CHANNELS = 256
LEVEL_STRIDES = OrderedDict([("0", 4), ("1", 8), ("2", 16), ("3", 32), ("pool", 64)])
TILE_M = 512  # rows per grid step: ~85% of HBM roofline vs ~29% at 128-row tiles


# ----------------------------------------------------------------------------
# Pallas kernel: fused (per-modality feature 1x1 conv) + (ConcatFusion 1x1 conv)
# for one tile of flattened-NHWC rows belonging to a single FPN level.
#   x      : (tm, 6)        bf16  both modalities' input channels
#   w_feat : (1, 6, 512)    bf16  block-diag [rgb 3->256 | depth 3->256], this level
#   b_feat : (1, 1, 512)    f32
#   w_fus  : (512, 256)     bf16  shared ConcatFusion weight
#   b_fus  : (1, 256)       f32
#   o      : (tm, 256)      f32
# ----------------------------------------------------------------------------
def _fused_levels_kernel(lvl_ids_ref, x_ref, wfeat_ref, bfeat_ref,
                         wfus_ref, bfus_ref, o_ref):
    del lvl_ids_ref  # consumed only by the index_maps (scalar prefetch)
    # Feature nets (both modalities at once via block-diagonal weight) -> (tm, 512)
    feat = jnp.dot(x_ref[...], wfeat_ref[0],
                   preferred_element_type=jnp.float32) + bfeat_ref[0]
    # ConcatFusion: feature layout is already [rgb(0:256) | depth(256:512)].
    fused = jnp.dot(feat.astype(jnp.bfloat16), wfus_ref[...],
                    preferred_element_type=jnp.float32) + bfus_ref[...]
    o_ref[...] = fused.astype(o_ref.dtype)


# ----------------------------------------------------------------------------
# Deterministic parameter initialization (synthetic; shapes from __init__)
# ----------------------------------------------------------------------------
def init_params(key, modalities=MODALITIES, out_channels=OUT_CHANNELS):
    params = {"feature_nets": {}, "fusion_net": None}
    for mod in modalities:
        params["feature_nets"][mod] = {}
        for name in LEVEL_STRIDES:
            key, kw, kb = jax.random.split(key, 3)
            w = jax.random.normal(kw, (3, out_channels), jnp.float32) * 0.1
            b = jax.random.normal(kb, (out_channels,), jnp.float32) * 0.01
            params["feature_nets"][mod][name] = (w, b)
    key, kw, kb = jax.random.split(key, 3)
    fus_in = out_channels * len(modalities)            # ConcatFusion in_channels
    wf = jax.random.normal(kw, (fus_in, out_channels), jnp.float32) * 0.05
    bf = jax.random.normal(kb, (out_channels,), jnp.float32) * 0.01
    params["fusion_net"] = (wf, bf)
    return params


def _prep_merged_params(params, modalities):
    """Pack per-modality/per-level feature weights into block-diagonal
    (L, 6, 512) bf16 + (L, 1, 512) f32, and the shared fusion conv."""
    n_mod = len(modalities)
    cin = 3 * n_mod
    cmid = OUT_CHANNELS * n_mod
    L = len(LEVEL_STRIDES)
    wfeat = jnp.zeros((L, cin, cmid), jnp.float32)
    bfeat = jnp.zeros((L, 1, cmid), jnp.float32)
    for li, name in enumerate(LEVEL_STRIDES):
        for mi, mod in enumerate(modalities):
            w, b = params["feature_nets"][mod][name]   # (3, 256), (256,)
            wfeat = wfeat.at[li, mi * 3:(mi + 1) * 3,
                             mi * OUT_CHANNELS:(mi + 1) * OUT_CHANNELS].set(w)
            bfeat = bfeat.at[li, 0,
                             mi * OUT_CHANNELS:(mi + 1) * OUT_CHANNELS].set(b)
    wf, bf = params["fusion_net"]
    return (wfeat.astype(jnp.bfloat16), bfeat,
            wf.astype(jnp.bfloat16), bf.reshape(1, OUT_CHANNELS))


def _pool2d_nhwc(x, f):
    """f x f mean pooling, NHWC."""
    if f == 1:
        return x
    N, H, W, C = x.shape
    return x.reshape(N, H // f, f, W // f, f, C).mean(axis=(2, 4))


# ----------------------------------------------------------------------------
# Forward pass (mirrors MultimodalNaive.forward)
# ----------------------------------------------------------------------------
def multimodal_naive_forward(stacked_input, params, modalities=MODALITIES,
                             tile_m=TILE_M):
    N, C, H, W = stacked_input.shape
    n_mod = len(modalities)
    assert C == 3 * n_mod
    assert tile_m % 8 == 0
    cin = 3 * n_mod
    cmid = OUT_CHANNELS * n_mod

    wfeat, bfeat, wfus, bfus = _prep_merged_params(params, modalities)

    # NCHW -> NHWC once (single full-res pass; all levels derive from it).
    x_nhwc = jnp.transpose(stacked_input, (0, 2, 3, 1)).astype(jnp.float32)

    # Progressive mean-pool to every FPN level; flatten, pad each level's rows
    # to the row tile, and stack all levels into one (sum_Mpad, 6) bf16 matrix.
    xs, tiles_per_level, row_counts, spatial_shapes = [], [], [], []
    cur, prev_s = x_nhwc, 1
    for name, s in LEVEL_STRIDES.items():
        cur = _pool2d_nhwc(cur, s // prev_s)
        prev_s = s
        n, h, w, _ = cur.shape
        M = n * h * w
        Mpad = ((M + tile_m - 1) // tile_m) * tile_m
        flat = cur.reshape(M, cin).astype(jnp.bfloat16)
        if Mpad != M:
            # Padded rows do pick up the bias inside the kernel but are sliced
            # off before any consumer sees them.
            flat = jnp.pad(flat, ((0, Mpad - M), (0, 0)))
        xs.append(flat)
        tiles_per_level.append(Mpad // tile_m)
        row_counts.append(M)
        spatial_shapes.append((n, h, w))
    x_big = jnp.concatenate(xs, axis=0)                      # (sum_Mpad, 6)
    lvl_ids = jnp.concatenate(
        [jnp.full((t,), li, dtype=jnp.int32)
         for li, t in enumerate(tiles_per_level)])           # (n_tiles,)
    n_tiles = int(lvl_ids.shape[0])

    out_big = pl.pallas_call(
        _fused_levels_kernel,
        out_shape=jax.ShapeDtypeStruct((x_big.shape[0], OUT_CHANNELS),
                                       jnp.float32),
        grid_spec=pltpu.PrefetchScalarGridSpec(
            num_scalar_prefetch=1,
            grid=(n_tiles,),
            in_specs=[
                pl.BlockSpec((tile_m, cin), lambda i, lvl: (i, 0)),
                pl.BlockSpec((1, cin, cmid), lambda i, lvl: (lvl[i], 0, 0)),
                pl.BlockSpec((1, 1, cmid), lambda i, lvl: (lvl[i], 0, 0)),
                pl.BlockSpec((cmid, OUT_CHANNELS), lambda i, lvl: (0, 0)),
                pl.BlockSpec((1, OUT_CHANNELS), lambda i, lvl: (0, 0)),
            ],
            out_specs=pl.BlockSpec((tile_m, OUT_CHANNELS),
                                   lambda i, lvl: (i, 0)),
        ),
        compiler_params=pltpu.CompilerParams(
            dimension_semantics=("parallel",)),
    )(lvl_ids, x_big, wfeat, bfeat, wfus, bfus)

    # Unpack per level; single NHWC -> NCHW transpose at the module boundary.
    output = OrderedDict()
    off = 0
    for idx, name in enumerate(LEVEL_STRIDES):
        n, h, w = spatial_shapes[idx]
        M = row_counts[idx]
        lvl_out = out_big[off:off + M]
        output[name] = lvl_out.reshape(n, h, w, OUT_CHANNELS).transpose(0, 3, 1, 2)
        off += tiles_per_level[idx] * tile_m
    return output


# ----------------------------------------------------------------------------
# Plain-JAX reference (f32) of the same stand-in forward, for validation
# ----------------------------------------------------------------------------
def _reference_forward(stacked_input, params, modalities=MODALITIES):
    N, _, H, W = stacked_input.shape
    wf, bf = params["fusion_net"]
    out = OrderedDict()
    for name, s in LEVEL_STRIDES.items():
        feats = []
        for mi, mod in enumerate(modalities):
            xm = stacked_input[:, mi * 3:(mi + 1) * 3, :, :]
            xd = xm.reshape(N, 3, H // s, s, W // s, s).mean(axis=(3, 5))
            w, b = params["feature_nets"][mod][name]
            f = jnp.einsum("nchw,cd->ndhw", xd, w) + b[None, :, None, None]
            feats.append(f)
        cat = jnp.concatenate(feats, axis=1)
        out[name] = jnp.einsum("nchw,cd->ndhw", cat, wf) + bf[None, :, None, None]
    return out


if __name__ == "__main__":
    key = jax.random.PRNGKey(0)
    key, kp, kx = jax.random.split(key, 3)
    params = init_params(kp)
    # batch=2, 6 channels (rgb+depth), 64x64 spatial so the deepest FPN level
    # ('pool', stride 64) still has a valid 1x1 spatial map.
    stacked_input = jax.random.normal(kx, (2, 6, 64, 64), jnp.float32)

    fwd = jax.jit(multimodal_naive_forward)
    out = fwd(stacked_input, params)
    out = jax.block_until_ready(out)

    # sanity: FPN-style keys and fused 256-channel NCHW outputs
    assert list(out.keys()) == ["0", "1", "2", "3", "pool"]
    assert out["0"].shape == (2, 256, 16, 16)
    assert out["pool"].shape == (2, 256, 1, 1)

    # numerical check vs. plain-JAX f32 reference (kernel uses bf16 matmuls)
    ref = _reference_forward(stacked_input, params)
    for name in LEVEL_STRIDES:
        err = float(jnp.max(jnp.abs(out[name] - ref[name])))
        assert err < 3e-2, f"level {name} max abs err {err}"

    print("KERNEL_OK")
</pallas_src>

<mosaic_0001>
module attributes {stable_mosaic.version = 11 : i64} {
  func.func @_fused_levels_kernel(%arg0: i32, %arg1: memref<5xi32, #tpu.memory_space<smem>>, %arg2: memref<512x6xbf16, #tpu.memory_space<vmem>>, %arg3: memref<1x6x512xbf16, #tpu.memory_space<vmem>>, %arg4: memref<1x1x512xf32, #tpu.memory_space<vmem>>, %arg5: memref<512x256xbf16, #tpu.memory_space<vmem>>, %arg6: memref<1x256xf32, #tpu.memory_space<vmem>>, %arg7: memref<512x256xf32, #tpu.memory_space<vmem>>) attributes {dimension_semantics = [#tpu.dimension_semantics<parallel>], iteration_bounds = array<i64: 5>, scalar_prefetch = 1 : i64, scratch_operands = 0 : i64, tpu.core_type = #tpu.core_type<tc>, window_params = [{transform_indices = @transform_0, window_bounds = array<i64: 512, 6>}, {transform_indices = @transform_1, window_bounds = array<i64: 1, 6, 512>}, {transform_indices = @transform_2, window_bounds = array<i64: 1, 1, 512>}, {pipeline_mode = #tpu.pipeline_mode<synchronous>, transform_indices = @transform_3, window_bounds = array<i64: 512, 256>}, {pipeline_mode = #tpu.pipeline_mode<synchronous>, transform_indices = @transform_4, window_bounds = array<i64: 1, 256>}, {transform_indices = @transform_5, window_bounds = array<i64: 512, 256>}]} {
    %c0 = arith.constant 0 : index
    %c0_0 = arith.constant 0 : index
    %0 = vector.load %arg2[%c0, %c0_0] : memref<512x6xbf16, #tpu.memory_space<vmem>>, vector<512x6xbf16>
    %c0_1 = arith.constant 0 : index
    %c0_2 = arith.constant 0 : index
    %c0_3 = arith.constant 0 : index
    %1 = vector.load %arg3[%c0_1, %c0_2, %c0_3] : memref<1x6x512xbf16, #tpu.memory_space<vmem>>, vector<1x6x512xbf16>
    %2 = vector.shape_cast %1 : vector<1x6x512xbf16> to vector<6x512xbf16>
    %cst = arith.constant dense<0.000000e+00> : vector<512x512xf32>
    %3 = tpu.matmul %0, %2, %cst {dimension_numbers = #tpu.dot_dimension_numbers<[1], [0], [0], [1], [0, 0, 1, 1], [], []>} : vector<512x6xbf16>, vector<6x512xbf16>, vector<512x512xf32> -> vector<512x512xf32>
    %c0_4 = arith.constant 0 : index
    %c0_5 = arith.constant 0 : index
    %c0_6 = arith.constant 0 : index
    %4 = vector.load %arg4[%c0_4, %c0_5, %c0_6] : memref<1x1x512xf32, #tpu.memory_space<vmem>>, vector<1x1x512xf32>
    %5 = vector.shape_cast %4 : vector<1x1x512xf32> to vector<1x512xf32>
    %6 = vector.broadcast %5 : vector<1x512xf32> to vector<512x512xf32>
    %7 = arith.addf %3, %6 : vector<512x512xf32>
    %8 = arith.truncf %7 : vector<512x512xf32> to vector<512x512xbf16>
    %c0_7 = arith.constant 0 : index
    %c0_8 = arith.constant 0 : index
    %9 = vector.load %arg5[%c0_7, %c0_8] : memref<512x256xbf16, #tpu.memory_space<vmem>>, vector<512x256xbf16>
    %cst_9 = arith.constant dense<0.000000e+00> : vector<512x256xf32>
    %10 = tpu.matmul %8, %9, %cst_9 {dimension_numbers = #tpu.dot_dimension_numbers<[1], [0], [0], [1], [0, 0, 1, 1], [], []>} : vector<512x512xbf16>, vector<512x256xbf16>, vector<512x256xf32> -> vector<512x256xf32>
    %c0_10 = arith.constant 0 : index
    %c0_11 = arith.constant 0 : index
    %11 = vector.load %arg6[%c0_10, %c0_11] : memref<1x256xf32, #tpu.memory_space<vmem>>, vector<1x256xf32>
    %12 = vector.broadcast %11 : vector<1x256xf32> to vector<512x256xf32>
    %13 = arith.addf %10, %12 : vector<512x256xf32>
    %c0_12 = arith.constant 0 : index
    %c0_13 = arith.constant 0 : index
    %14 = vector.load %arg7[%c0_12, %c0_13] : memref<512x256xf32, #tpu.memory_space<vmem>>, vector<512x256xf32>
    tpu.vector_store %arg7[%c0_12, %c0_13], %13 {strides = array<i32>} : memref<512x256xf32, #tpu.memory_space<vmem>>, vector<512x256xf32>,
    return
  }
  func.func @transform_0(%arg0: i32, %arg1: memref<5xi32, #tpu.memory_space<smem>>) -> (i32, i32) {
    %c0_i32 = arith.constant 0 : i32
    %c0_i32_0 = arith.constant 0 : i32
    return %arg0, %c0_i32 : i32, i32
  }
  func.func @transform_1(%arg0: i32, %arg1: memref<5xi32, #tpu.memory_space<smem>>) -> (i32, i32, i32) {
    %0 = arith.index_cast %arg0 : i32 to index
    %1 = memref.load %arg1[%0] : memref<5xi32, #tpu.memory_space<smem>>
    %c0_i32 = arith.constant 0 : i32
    %c0_i32_0 = arith.constant 0 : i32
    %c0_i32_1 = arith.constant 0 : i32
    return %1, %c0_i32, %c0_i32_0 : i32, i32, i32
  }
  func.func @transform_2(%arg0: i32, %arg1: memref<5xi32, #tpu.memory_space<smem>>) -> (i32, i32, i32) {
    %0 = arith.index_cast %arg0 : i32 to index
    %1 = memref.load %arg1[%0] : memref<5xi32, #tpu.memory_space<smem>>
    %c0_i32 = arith.constant 0 : i32
    %c0_i32_0 = arith.constant 0 : i32
    %c0_i32_1 = arith.constant 0 : i32
    return %1, %c0_i32, %c0_i32_0 : i32, i32, i32
  }
  func.func @transform_3(%arg0: i32, %arg1: memref<5xi32, #tpu.memory_space<smem>>) -> (i32, i32) {
    %c0_i32 = arith.constant 0 : i32
    %c0_i32_0 = arith.constant 0 : i32
    %c0_i32_1 = arith.constant 0 : i32
    return %c0_i32, %c0_i32_0 : i32, i32
  }
  func.func @transform_4(%arg0: i32, %arg1: memref<5xi32, #tpu.memory_space<smem>>) -> (i32, i32) {
    %c0_i32 = arith.constant 0 : i32
    %c0_i32_0 = arith.constant 0 : i32
    %c0_i32_1 = arith.constant 0 : i32
    return %c0_i32, %c0_i32_0 : i32, i32
  }
  func.func @transform_5(%arg0: i32, %arg1: memref<5xi32, #tpu.memory_space<smem>>) -> (i32, i32) {
    %c0_i32 = arith.constant 0 : i32
    %c0_i32_0 = arith.constant 0 : i32
    return %arg0, %c0_i32 : i32, i32
  }
}

</mosaic_0001>

<bundles_post_ra>
// kernel: multimodal_naive_forward.1
= control target key start
LH: loop header
LB: loop body
LE: loop exit
PB: predicated region body
PF: predicated region fallthrough
CT: control target
= control target key end

     0   :  { %s5527_s0 = inlined_call_operand.vmem [shape: s32[5], index: 0, kind: input, shape index: {}]   ;;  %s5528_s1 = inlined_call_operand.vmem [shape: bf16[2560,6], index: 1, kind: input, shape index: {}]   ;;  %s5529_s2 = inlined_call_operand.vmem [shape: bf16[5,6,512], index: 2, kind: input, shape index: {}]   ;;  %s5530_s3 = inlined_call_operand.vmem [shape: f32[5,1,512], index: 3, kind: input, shape index: {}]   ;;  %s5531_s4 = inlined_call_operand.vmem [shape: bf16[512,256], index: 4, kind: input, shape index: {}]   ;;  %s5532_s5 = inlined_call_operand.vmem [shape: f32[1,256], index: 5, kind: input, shape index: {}]   ;;  %s5533_s6 = inlined_call_operand.vmem [shape: f32[2560,256], index: 6, kind: output, shape index: {}]  }
   0x1   :  { %s11_s23 = sshll.u32 %s5527_s0, 4  ;;  %s12_s23 = int_to_ptr.vmem [resolvable:$true] %s11_s23 }
   0x2   :  { %s3384_s24 = scalar_lea.vmem %s12_s23, 16  ;;  %p3389_p1 = scmp.lt.s32.totalorder %s12_s23, %s12_s23 }
   0x3   :  { %p3385_p0 = scmp.ne.s32.totalorder %s12_s23, %s3384_s24  ;;  %p3390_p2 = scmp.lt.s32.totalorder %s3384_s24, %s3384_s24 }
   0x5   :  { %p3391_p3 = por %p3390_p2, %p3389_p1 }
   0x7   :  { %p3392_p4 = pnand %p3391_p3, %p3385_p0 }
   0x9   :  { %3395 = shalt.err (!%p3392_p4)  }
   0xa   :  { %s3406_s25 = smov [#allocation3]  }
   0xb   :  { %14 = dma.vmem_to_smem %s12_s23, 16, %s3406_s25, [#allocation2] }
   0xc   :  { %3400 = dma.done.wait [#allocation2], 16 }
   0xd   :  { %3401 = vsyncadd [#allocation2], 4294967280 }
   0xe   :  { %16 = sfence }
   0xf   :  { %s3446_s26 = smov 0  }
  0x10 LB: > { %s3452_s0 = sadd.s32 4294967295, %s3404_s26   ;;  %p2807_p5 = scmp.ge.s32.totalorder %s3404_s26, 1  ;;  %s3404_s26 = sphi %s3446_s26, %s22_s26  }
  0x11   : > { %p222_p6 = scmp.lt.s32.totalorder %s3404_s26, 6 }
  0x13   : > { %p223_p7 = pnand %p2807_p5, %p222_p6 }
  0x14   : > { %s268_s27 = sld [smem:[#allocation3 + %s3452_s0]] (!%p223_p7)  ;;  %s2808_s28 = sshll.u32 (!%p223_p7), %s3452_s0, 6  ;;  %v3407_v0 = vmov (!%p223_p7), 0   ;;  %vm644_vm0 = vcmask (!%p223_p7), 1042432   ;;  %v3259_v3 = vld [vmem:[%s5531_s4 + $0x4] ss:$8 sps:$4 sm:$0xff] (!%p223_p7)  }
  0x15   : > { %226 = sbr.rel (%p223_p7) target bundleno = 762 (0x2fa), region = 40  ;;  %689 = vmatprep.mubr.bf16.mxu0 (!%p223_p7), %v3407_v0  ;;  %1042 = vmatprep.mubr.bf16.mxu1 (!%p223_p7), %v3407_v0  ;;  %p263_p8 = scmp.lt.s32.totalorder (!%p223_p7), %s2808_s28, 319  ;;  %v3262_v8 = vld [vmem:[%s5531_s4 + $0x104] ss:$8 sps:$4 sm:$0xff] (!%p223_p7)   ;;  %v3257_v9 = vld [vmem:[%s5531_s4] ss:$8 sps:$4 sm:$0xff] (!%p223_p7)  }
  0x16   : > { %v3260_v10 = vld [vmem:[%s5531_s4 + $0x100] ss:$8 sps:$4 sm:$0xff] (!%p223_p7)   ;;  %vm547_vm1 = vcmask (!%p223_p7), 48128   ;;  %v3265_v14 = vld [vmem:[%s5531_s4 + $0x10] ss:$8 sps:$4 sm:$0xff] (!%p223_p7)   ;;  %s275_s15 = sld [smem:[#allocation3 + %s3452_s0]] (!%p223_p7) }
  0x17   : > { %v3267_v15 = vld [vmem:[%s5531_s4 + $0x14] ss:$8 sps:$4 sm:$0xff] (!%p223_p7)   ;;  %v3268_v17 = vld [vmem:[%s5531_s4 + $0x110] ss:$8 sps:$4 sm:$0xff] (!%p223_p7)   ;;  %v3275_v18 = vld [vmem:[%s5531_s4 + $0x24] ss:$8 sps:$4 sm:$0xff] (!%p223_p7)  }
  0x18   : > { %v3270_v16 = vld [vmem:[%s5531_s4 + $0x114] ss:$8 sps:$4 sm:$0xff] (!%p223_p7)   ;;  %v3278_v19 = vld [vmem:[%s5531_s4 + $0x124] ss:$8 sps:$4 sm:$0xff] (!%p223_p7)   ;;  %v3273_v21 = vld [vmem:[%s5531_s4 + $0x20] ss:$8 sps:$4 sm:$0xff] (!%p223_p7)  }
  0x19   : > { %v3276_v22 = vld [vmem:[%s5531_s4 + $0x120] ss:$8 sps:$4 sm:$0xff] (!%p223_p7)   ;;  %v3283_v23 = vld [vmem:[%s5531_s4 + $0x34] ss:$8 sps:$4 sm:$0xff] (!%p223_p7)   ;;  %v3281_v25 = vld [vmem:[%s5531_s4 + $0x30] ss:$8 sps:$4 sm:$0xff] (!%p223_p7)  }
  0x1a   : > { %p269_p9 = scmp.lt.s32.totalorder (!%p223_p7), %s268_s27, 4  ;;  %v3286_v24 = vld [vmem:[%s5531_s4 + $0x134] ss:$8 sps:$4 sm:$0xff] (!%p223_p7)   ;;  %v3284_v26 = vld [vmem:[%s5531_s4 + $0x130] ss:$8 sps:$4 sm:$0xff] (!%p223_p7)  }
  0x1b   : > { %v3291_v27 = vld [vmem:[%s5531_s4 + $0x44] ss:$8 sps:$4 sm:$0xff] (!%p223_p7)   ;;  %v3289_v30 = vld [vmem:[%s5531_s4 + $0x40] ss:$8 sps:$4 sm:$0xff] (!%p223_p7)   ;;  %v3299_v32 = vld [vmem:[%s5531_s4 + $0x54] ss:$8 sps:$4 sm:$0xff] (!%p223_p7)  }
  0x1c   : > { %s5601_s28 = smov (!%p263_p8, %s2808_s28), 319  ;;  %s5603_s27 = smov (!%p269_p9, %s268_s27), 4  ;;  %v3294_v28 = vld [vmem:[%s5531_s4 + $0x144] ss:$8 sps:$4 sm:$0xff]   ;;  %v3292_v31 = vld [vmem:[%s5531_s4 + $0x140] ss:$8 sps:$4 sm:$0xff]  }
  0x1d   : > { %s2809_s29 = sshll.u32 %s5601_s28, 2  ;;  %s2984_s9 = sshll.u32 %s5603_s27, 4  ;;  %v3302_v33 = vld [vmem:[%s5531_s4 + $0x154] ss:$8 sps:$4 sm:$0xff]   ;;  %v3297_v34 = vld [vmem:[%s5531_s4 + $0x50] ss:$8 sps:$4 sm:$0xff]  }
  0x1e   : > { %s3466_s8 = scalar_lea.vmem %s5528_s1, %s2809_s29  ;;  %s273_s12 = scalar_lea.vmem %s5529_s2, %s2984_s9  ;;  %v3300_v35 = vld [vmem:[%s5531_s4 + $0x150] ss:$8 sps:$4 sm:$0xff]   ;;  %v3307_v36 = vld [vmem:[%s5531_s4 + $0x64] ss:$8 sps:$4 sm:$0xff]   ;;  %v3305_v39 = vld [vmem:[%s5531_s4 + $0x60] ss:$8 sps:$4 sm:$0xff]  }
  0x1f   : > { %v353_v1 = vld [vmem:[%s273_s12] sm:$0x77]  ;;  %v354_v2 = vld [vmem:[%s273_s12 + $0x8] sm:$0x77]  ;;  %v3264_v29 = vld [vmem:[%s3466_s8 + $0x10] sm:$0xff]   ;;  %p276_p10 = scmp.lt.s32.totalorder %s275_s15, 4 }
  0x20   : > { %v2849_v4 = vcombine.high %v353_v1, %v353_v1  ;;  %v2851_v5 = vcombine.high %v354_v2, %v354_v2  ;;  %v2848_v6 = vcombine.low %v353_v1, %v353_v1  ;;  %v2850_v7 = vcombine.low %v354_v2, %v354_v2  ;;  %v3256_v13 = vld [vmem:[%s3466_s8] sm:$0xff]   ;;  %v3263_v20 = vld [vmem:[%s3466_s8 + $0x8] sm:$0xff]   ;;  %v3271_v38 = vld [vmem:[%s3466_s8 + $0x18] sm:$0xff]   ;;  %s2985_s20 = sshll.u32 %s5601_s28, 4 }
  0x21   : > { %v3310_v37 = vld [vmem:[%s5531_s4 + $0x164] ss:$8 sps:$4 sm:$0xff]   ;;  %v3308_v40 = vld [vmem:[%s5531_s4 + $0x160] ss:$8 sps:$4 sm:$0xff]   ;;  %v3315_v41 = vld [vmem:[%s5531_s4 + $0x74] ss:$8 sps:$4 sm:$0xff]   ;;  %s5213_s23 = scalar_lea.vmem %s5533_s6, %s2985_s20 }
  0x22   : > { %2852 = vmatprep.subr.msk.bf16.mxu0 %vm644_vm0, %v2849_v4  ;;  %2885 = vmatprep.subr.msk.bf16.mxu1 %vm644_vm0, %v2851_v5  ;;  %v646_v11 = vsel %vm644_vm0, %v2848_v6, 0  ;;  %v652_v12 = vsel %vm644_vm0, %v2850_v7, 0  ;;  %v3318_v42 = vld [vmem:[%s5531_s4 + $0x174] ss:$8 sps:$4 sm:$0xff]   ;;  %v3272_v43 = vld [vmem:[%s3466_s8 + $0x20] sm:$0xff]   ;;  %v3279_v56 = vld [vmem:[%s3466_s8 + $0x28] sm:$0xff]  }
  0x23   : > { %658 = vmatpush1.bf16.msra.mxu0 %v646_v11  ;;  %1011 = vmatpush1.bf16.msra.mxu1 %v652_v12  ;;  %v3313_v44 = vld [vmem:[%s5531_s4 + $0x70] ss:$8 sps:$4 sm:$0xff]   ;;  %v3323_v46 = vld [vmem:[%s5531_s4 + $0x84] ss:$8 sps:$4 sm:$0xff]   ;;  %v3321_v48 = vld [vmem:[%s5531_s4 + $0x80] ss:$8 sps:$4 sm:$0xff]  }
  0x24   : > { %1887 = vmatprep.subr.bf16.mxu1 %v3259_v3  ;;  %2240 = vmatprep.subr.bf16.mxu0 %v3262_v8  ;;  %v3316_v45 = vld [vmem:[%s5531_s4 + $0x170] ss:$8 sps:$4 sm:$0xff]   ;;  %v3326_v47 = vld [vmem:[%s5531_s4 + $0x184] ss:$8 sps:$4 sm:$0xff]   ;;  %v3324_v49 = vld [vmem:[%s5531_s4 + $0x180] ss:$8 sps:$4 sm:$0xff]  }
  0x25   : > { %v3331_v50 = vld [vmem:[%s5531_s4 + $0x94] ss:$8 sps:$4 sm:$0xff]   ;;  %v3329_v52 = vld [vmem:[%s5531_s4 + $0x90] ss:$8 sps:$4 sm:$0xff]   ;;  %v3339_v54 = vld [vmem:[%s5531_s4 + $0xa4] ss:$8 sps:$4 sm:$0xff]  }
  0x26   : > { %2853 = vmatmul.mubr.msk.bf16.vlgmr.msra.gmra.mrb[0].mxu0 %vm547_vm1, %v3256_v13  ;;  %2886 = vmatmul.mubr.msk.bf16.vlgmr.msra.gmra.mrb[0].mxu1 %vm547_vm1, %v3256_v13  ;;  %v3334_v51 = vld [vmem:[%s5531_s4 + $0x194] ss:$8 sps:$4 sm:$0xff]   ;;  %v3332_v53 = vld [vmem:[%s5531_s4 + $0x190] ss:$8 sps:$4 sm:$0xff]   ;;  %v3342_v55 = vld [vmem:[%s5531_s4 + $0x1a4] ss:$8 sps:$4 sm:$0xff]  }
  0x27   : > { %1888 = vmatpush1.bf16.msra.mxu1 %v3257_v9  ;;  %2241 = vmatpush1.bf16.msra.mxu0 %v3260_v10  ;;  %v3337_v57 = vld [vmem:[%s5531_s4 + $0xa0] ss:$8 sps:$4 sm:$0xff]   ;;  %v3280_v59 = vld [vmem:[%s3466_s8 + $0x30] sm:$0xff]   ;;  %v3287_v1 = vld [vmem:[%s3466_s8 + $0x38] sm:$0xff]   ;;  %s5605_s15 = smov (!%p276_p10, %s275_s15), 4 }
  0x28   : > { %699 = vmatprep.mubr.bf16.mxu0 %v3407_v0  ;;  %1052 = vmatprep.mubr.bf16.mxu1 %v3407_v0  ;;  %v3340_v58 = vld [vmem:[%s5531_s4 + $0x1a0] ss:$8 sps:$4 sm:$0xff]   ;;  %v3345_v60 = vld [vmem:[%s5531_s4 + $0xb0] ss:$8 sps:$4 sm:$0xff]   ;;  %v3347_v61 = vld [vmem:[%s5531_s4 + $0xb4] ss:$8 sps:$4 sm:$0xff]  }
  0x29   : > { %1889 = vmatprep.subr.bf16.mxu1 %v3267_v15  ;;  %2242 = vmatprep.subr.bf16.mxu0 %v3270_v16  ;;  %v3348_v62 = vld [vmem:[%s5531_s4 + $0x1b0] ss:$8 sps:$4 sm:$0xff]   ;;  %v3350_v63 = vld [vmem:[%s5531_s4 + $0x1b4] ss:$8 sps:$4 sm:$0xff]   ;;  %v3288_v2 = vld [vmem:[%s3466_s8 + $0x40] sm:$0xff]   ;;  %s2812_s0 = sshll.u32 %s5605_s15, 2 }
  0x2a   : > { %v3353_v3 = vld [vmem:[%s5531_s4 + $0xc0] ss:$8 sps:$4 sm:$0xff]   ;;  %v3355_v4 = vld [vmem:[%s5531_s4 + $0xc4] ss:$8 sps:$4 sm:$0xff]   ;;  %v3296_v8 = vld [vmem:[%s3466_s8 + $0x50] sm:$0xff]   ;;  %s279_s18 = scalar_lea.vmem %s5530_s3, %s2812_s0 }
  0x2b   : > { %1890 = vmatpush1.bf16.msra.mxu1 %v3265_v14  ;;  %2243 = vmatpush1.bf16.msra.mxu0 %v3268_v17  ;;  %v3356_v5 = vld [vmem:[%s5531_s4 + $0x1c0] ss:$8 sps:$4 sm:$0xff]   ;;  %v3358_v6 = vld [vmem:[%s5531_s4 + $0x1c4] ss:$8 sps:$4 sm:$0xff]   ;;  %v3361_v9 = vld [vmem:[%s5531_s4 + $0xd0] ss:$8 sps:$4 sm:$0xff]  }
  0x2c   : > { %1891 = vmatprep.subr.bf16.mxu1 %v3275_v18  ;;  %2244 = vmatprep.subr.bf16.mxu0 %v3278_v19  ;;  %v3295_v7 = vld [vmem:[%s3466_s8 + $0x48] sm:$0xff]   ;;  %v3363_v10 = vld [vmem:[%s5531_s4 + $0xd4] ss:$8 sps:$4 sm:$0xff]   ;;  %v3364_v11 = vld [vmem:[%s5531_s4 + $0x1d0] ss:$8 sps:$4 sm:$0xff]  }
  0x2d   : > { %v3366_v12 = vld [vmem:[%s5531_s4 + $0x1d4] ss:$8 sps:$4 sm:$0xff]   ;;  %v3304_v14 = vld [vmem:[%s3466_s8 + $0x60] sm:$0xff]   ;;  %v3311_v19 = vld [vmem:[%s3466_s8 + $0x68] sm:$0xff]  }
  0x2e   : > { %2854 = vmatmul.mubr.msk.bf16.gmra.mrb[4].mxu0 %vm547_vm1, %v3263_v20  ;;  %2887 = vmatmul.mubr.msk.bf16.gmra.mrb[4].mxu1 %vm547_vm1, %v3263_v20  ;;  %v3303_v13 = vld [vmem:[%s3466_s8 + $0x58] sm:$0xff]   ;;  %v3369_v15 = vld [vmem:[%s5531_s4 + $0xe0] ss:$8 sps:$4 sm:$0xff]   ;;  %v3371_v16 = vld [vmem:[%s5531_s4 + $0xe4] ss:$8 sps:$4 sm:$0xff]  }
  0x2f   : > { %709 = vmatprep.mubr.bf16.mxu0 %v3407_v0  ;;  %1062 = vmatprep.mubr.bf16.mxu1 %v3407_v0  ;;  %v3372_v17 = vld [vmem:[%s5531_s4 + $0x1e0] ss:$8 sps:$4 sm:$0xff]   ;;  %v3374_v18 = vld [vmem:[%s5531_s4 + $0x1e4] ss:$8 sps:$4 sm:$0xff]   ;;  %v3312_v20 = vld [vmem:[%s3466_s8 + $0x70] sm:$0xff]  }
  0x30   : > { %1892 = vmatpush1.bf16.msra.mxu1 %v3273_v21  ;;  %2245 = vmatpush1.bf16.msra.mxu0 %v3276_v22  ;;  %v3377_v21 = vld [vmem:[%s5531_s4 + $0xf0] ss:$8 sps:$4 sm:$0xff]   ;;  %v3379_v22 = vld [vmem:[%s5531_s4 + $0xf4] ss:$8 sps:$4 sm:$0xff]  }
  0x31   : > { %1893 = vmatprep.subr.bf16.mxu1 %v3283_v23  ;;  %2246 = vmatprep.subr.bf16.mxu0 %v3286_v24  ;;  %v3380_v23 = vld [vmem:[%s5531_s4 + $0x1f0] ss:$8 sps:$4 sm:$0xff]   ;;  %v3382_v24 = vld [vmem:[%s5531_s4 + $0x1f4] ss:$8 sps:$4 sm:$0xff]  }
  0x34   : > { %1894 = vmatpush1.bf16.msra.mxu1 %v3281_v25  ;;  %2247 = vmatpush1.bf16.msra.mxu0 %v3284_v26  ;;  %v3319_v25 = vld [vmem:[%s3466_s8 + $0x78] sm:$0xff]   ;;  %v3320_v26 = vld [vmem:[%s3466_s8 + $0x80] sm:$0xff]  }
  0x35   : > { %1895 = vmatprep.subr.bf16.mxu1 %v3291_v27  ;;  %2248 = vmatprep.subr.bf16.mxu0 %v3294_v28  ;;  %v3327_v27 = vld [vmem:[%s3466_s8 + $0x88] sm:$0xff]   ;;  %v3328_v28 = vld [vmem:[%s3466_s8 + $0x90] sm:$0xff]  }
  0x36   : > { %2855 = vmatmul.mubr.msk.bf16.gmra.mrb[8].mxu0 %vm547_vm1, %v3264_v29  ;;  %2888 = vmatmul.mubr.msk.bf16.gmra.mrb[8].mxu1 %vm547_vm1, %v3264_v29  ;;  %v3335_v29 = vld [vmem:[%s3466_s8 + $0x98] sm:$0xff]  }
  0x37   : > { %719 = vmatprep.mubr.bf16.mxu0 %v3407_v0  ;;  %1072 = vmatprep.mubr.bf16.mxu1 %v3407_v0 }
  0x38   : > { %1896 = vmatpush1.bf16.msra.mxu1 %v3289_v30  ;;  %2249 = vmatpush1.bf16.msra.mxu0 %v3292_v31  ;;  %v3336_v30 = vld [vmem:[%s3466_s8 + $0xa0] sm:$0xff]   ;;  %v3343_v31 = vld [vmem:[%s3466_s8 + $0xa8] sm:$0xff]  }
  0x39   : > { %1897 = vmatprep.subr.bf16.mxu1 %v3299_v32  ;;  %2250 = vmatprep.subr.bf16.mxu0 %v3302_v33  ;;  %v3344_v32 = vld [vmem:[%s3466_s8 + $0xb0] sm:$0xff]   ;;  %v3351_v33 = vld [vmem:[%s3466_s8 + $0xb8] sm:$0xff]  }
  0x3c   : > { %1898 = vmatpush1.bf16.msra.mxu1 %v3297_v34  ;;  %2251 = vmatpush1.bf16.msra.mxu0 %v3300_v35  ;;  %v3352_v34 = vld [vmem:[%s3466_s8 + $0xc0] sm:$0xff]   ;;  %v3359_v35 = vld [vmem:[%s3466_s8 + $0xc8] sm:$0xff]  }
  0x3d   : > { %1899 = vmatprep.subr.bf16.mxu1 %v3307_v36  ;;  %2252 = vmatprep.subr.bf16.mxu0 %v3310_v37  ;;  %v357_v36 = vlaneseq }
  0x3e   : > { %2856 = vmatmul.mubr.msk.bf16.gmra.mrb[12].mxu0 %vm547_vm1, %v3271_v38  ;;  %2889 = vmatmul.mubr.msk.bf16.gmra.mrb[12].mxu1 %vm547_vm1, %v3271_v38  ;;  %v3360_v38 = vld [vmem:[%s3466_s8 + $0xd0] sm:$0xff]  }
  0x3f   : > { %729 = vmatprep.mubr.bf16.mxu0 %v3407_v0  ;;  %1082 = vmatprep.mubr.bf16.mxu1 %v3407_v0  ;;  %v3794_v37 = vshrl.u32 %v357_v36, 7 }
  0x40   : > { %1900 = vmatpush1.bf16.msra.mxu1 %v3305_v39  ;;  %2253 = vmatpush1.bf16.msra.mxu0 %v3308_v40 }
  0x41   : > { %1901 = vmatprep.subr.bf16.mxu1 %v3315_v41  ;;  %2254 = vmatprep.subr.bf16.mxu0 %v3318_v42  ;;  %v5535_v39 = vsub.s32 0, %v3794_v37  ;;  %v5534_v40 = vsub.s32 1, %v3794_v37  ;;  %v367_v41 = vsub.s32 2, %v3794_v37  ;;  %v355_v42 = vld [vmem:[%s279_s18] sm:$0xf] }
  0x44   : > { %1902 = vmatpush1.bf16.msra.mxu1 %v3313_v44  ;;  %2255 = vmatpush1.bf16.msra.mxu0 %v3316_v45  ;;  %v3808_v44 = vrot.slane %v355_v42, %v5535_v39  ;;  %v3812_v45 = vrot.slane %v355_v42, %v5534_v40 }
  0x45   : > { %1903 = vmatprep.subr.bf16.mxu1 %v3323_v46  ;;  %2256 = vmatprep.subr.bf16.mxu0 %v3326_v47  ;;  %v3816_v46 = vrot.slane %v355_v42, %v367_v41 }
  0x46   : > { %2857 = vmatmul.mubr.msk.bf16.gmra.mrb[16].mxu0 %vm547_vm1, %v3272_v43  ;;  %2890 = vmatmul.mubr.msk.bf16.gmra.mrb[16].mxu1 %vm547_vm1, %v3272_v43  ;;  %v371_v43 = vsub.s32 3, %v3794_v37 }
  0x47   : > { %739 = vmatprep.mubr.bf16.mxu0 %v3407_v0  ;;  %1092 = vmatprep.mubr.bf16.mxu1 %v3407_v0 }
  0x48   : > { %1904 = vmatpush1.bf16.msra.mxu1 %v3321_v48  ;;  %2257 = vmatpush1.bf16.msra.mxu0 %v3324_v49  ;;  %v3818_v49 = vrot.slane %v355_v42, %v371_v43 }
  0x49   : > { %1905 = vmatprep.subr.bf16.mxu1 %v3331_v50  ;;  %2258 = vmatprep.subr.bf16.mxu0 %v3334_v51 }
  0x4c   : > { %1906 = vmatpush1.bf16.msra.mxu1 %v3329_v52  ;;  %2259 = vmatpush1.bf16.msra.mxu0 %v3332_v53  ;;  %v3367_v53 = vld [vmem:[%s3466_s8 + $0xd8] sm:$0xff]  }
  0x4d   : > { %1907 = vmatprep.subr.bf16.mxu1 %v3339_v54  ;;  %2260 = vmatprep.subr.bf16.mxu0 %v3342_v55 }
  0x4e   : > { %2858 = vmatmul.mubr.msk.bf16.gmra.mrb[20].mxu0 %vm547_vm1, %v3279_v56  ;;  %2891 = vmatmul.mubr.msk.bf16.gmra.mrb[20].mxu1 %vm547_vm1, %v3279_v56 }
  0x4f   : > { %749 = vmatprep.mubr.bf16.mxu0 %v3407_v0  ;;  %1102 = vmatprep.mubr.bf16.mxu1 %v3407_v0 }
  0x50   : > { %1908 = vmatpush1.bf16.msra.mxu1 %v3337_v57  ;;  %2261 = vmatpush1.bf16.msra.mxu0 %v3340_v58 }
  0x51   : > { %1909 = vmatprep.subr.bf16.mxu1 %v3347_v61  ;;  %2262 = vmatprep.subr.bf16.mxu0 %v3350_v63 }
  0x54   : > { %1910 = vmatpush1.bf16.msra.mxu1 %v3345_v60  ;;  %2263 = vmatpush1.bf16.msra.mxu0 %v3348_v62 }
  0x55   : > { %1911 = vmatprep.subr.bf16.mxu1 %v3355_v4  ;;  %2264 = vmatprep.subr.bf16.mxu0 %v3358_v6 }
  0x56   : > { %2859 = vmatmul.mubr.msk.bf16.gmra.mrb[24].mxu0 %vm547_vm1, %v3280_v59  ;;  %2892 = vmatmul.mubr.msk.bf16.gmra.mrb[24].mxu1 %vm547_vm1, %v3280_v59 }
  0x57   : > { %759 = vmatprep.mubr.bf16.mxu0 %v3407_v0  ;;  %1112 = vmatprep.mubr.bf16.mxu1 %v3407_v0 }
  0x58   : > { %1912 = vmatpush1.bf16.msra.mxu1 %v3353_v3  ;;  %2265 = vmatpush1.bf16.msra.mxu0 %v3356_v5 }
  0x59   : > { %1913 = vmatprep.subr.bf16.mxu1 %v3363_v10  ;;  %2266 = vmatprep.subr.bf16.mxu0 %v3366_v12 }
  0x5c   : > { %1914 = vmatpush1.bf16.msra.mxu1 %v3361_v9  ;;  %2267 = vmatpush1.bf16.msra.mxu0 %v3364_v11  ;;  %v3368_v11 = vld [vmem:[%s3466_s8 + $0xe0] sm:$0xff]  }
  0x5d   : > { %1915 = vmatprep.subr.bf16.mxu1 %v3371_v16  ;;  %2268 = vmatprep.subr.bf16.mxu0 %v3374_v18 }
  0x5e   : > { %2860 = vmatmul.mubr.msk.bf16.gmra.mrb[28].mxu0 %vm547_vm1, %v3287_v1  ;;  %2893 = vmatmul.mubr.msk.bf16.gmra.mrb[28].mxu1 %vm547_vm1, %v3287_v1 }
  0x5f   : > { %769 = vmatprep.mubr.bf16.mxu0 %v3407_v0  ;;  %1122 = vmatprep.mubr.bf16.mxu1 %v3407_v0 }
  0x60   : > { %1916 = vmatpush1.bf16.msra.mxu1 %v3369_v15  ;;  %2269 = vmatpush1.bf16.msra.mxu0 %v3372_v17 }
  0x61   : > { %1917 = vmatprep.subr.bf16.mxu1 %v3379_v22  ;;  %2270 = vmatprep.subr.bf16.mxu0 %v3382_v24 }
  0x64   : > { %1918 = vmatpush1.bf16.msra.mxu1 %v3377_v21  ;;  %2271 = vmatpush1.bf16.msra.mxu0 %v3380_v23 }
  0x66   : > { %2861 = vmatmul.mubr.msk.bf16.gmra.mrb[32].mxu0 %vm547_vm1, %v3288_v2  ;;  %2894 = vmatmul.mubr.msk.bf16.gmra.mrb[32].mxu1 %vm547_vm1, %v3288_v2 }
  0x67   : > { %779 = vmatprep.mubr.bf16.mxu0 %v3407_v0  ;;  %1132 = vmatprep.mubr.bf16.mxu1 %v3407_v0 }
  0x6e   : > { %2862 = vmatmul.mubr.msk.bf16.gmra.mrb[36].mxu0 %vm547_vm1, %v3295_v7  ;;  %2895 = vmatmul.mubr.msk.bf16.gmra.mrb[36].mxu1 %vm547_vm1, %v3295_v7 }
  0x6f   : > { %789 = vmatprep.mubr.bf16.mxu0 %v3407_v0  ;;  %1142 = vmatprep.mubr.bf16.mxu1 %v3407_v0 }
  0x76   : > { %2863 = vmatmul.mubr.msk.bf16.gmra.mrb[40].mxu0 %vm547_vm1, %v3296_v8  ;;  %2896 = vmatmul.mubr.msk.bf16.gmra.mrb[40].mxu1 %vm547_vm1, %v3296_v8 }
  0x77   : > { %799 = vmatprep.mubr.bf16.mxu0 %v3407_v0  ;;  %1152 = vmatprep.mubr.bf16.mxu1 %v3407_v0 }
  0x7e   : > { %2864 = vmatmul.mubr.msk.bf16.gmra.mrb[44].mxu0 %vm547_vm1, %v3303_v13  ;;  %2897 = vmatmul.mubr.msk.bf16.gmra.mrb[44].mxu1 %vm547_vm1, %v3303_v13 }
  0x7f   : > { %809 = vmatprep.mubr.bf16.mxu0 %v3407_v0  ;;  %1162 = vmatprep.mubr.bf16.mxu1 %v3407_v0 }
  0x86   : > { %2865 = vmatmul.mubr.msk.bf16.gmra.mrb[48].mxu0 %vm547_vm1, %v3304_v14  ;;  %2898 = vmatmul.mubr.msk.bf16.gmra.mrb[48].mxu1 %vm547_vm1, %v3304_v14 }
  0x87   : > { %819 = vmatprep.mubr.bf16.mxu0 %v3407_v0  ;;  %1172 = vmatprep.mubr.bf16.mxu1 %v3407_v0 }
  0x8e   : > { %2866 = vmatmul.mubr.msk.bf16.gmra.mrb[52].mxu0 %vm547_vm1, %v3311_v19  ;;  %2899 = vmatmul.mubr.msk.bf16.gmra.mrb[52].mxu1 %vm547_vm1, %v3311_v19 }
  0x8f   : > { %829 = vmatprep.mubr.bf16.mxu0 %v3407_v0  ;;  %1182 = vmatprep.mubr.bf16.mxu1 %v3407_v0 }
  0x96   : > { %2867 = vmatmul.mubr.msk.bf16.gmra.mrb[56].mxu0 %vm547_vm1, %v3312_v20  ;;  %2900 = vmatmul.mubr.msk.bf16.gmra.mrb[56].mxu1 %vm547_vm1, %v3312_v20 }
  0x97   : > { %839 = vmatprep.mubr.bf16.mxu0 %v3407_v0  ;;  %1192 = vmatprep.mubr.bf16.mxu1 %v3407_v0 }
  0x9e   : > { %2868 = vmatmul.mubr.msk.bf16.gmra.mrb[60].mxu0 %vm547_vm1, %v3319_v25  ;;  %2901 = vmatmul.mubr.msk.bf16.gmra.mrb[60].mxu1 %vm547_vm1, %v3319_v25 }
  0x9f   : > { %849 = vmatprep.mubr.bf16.mxu0 %v3407_v0  ;;  %1202 = vmatprep.mubr.bf16.mxu1 %v3407_v0 }
  0xa6   : > { %2869 = vmatmul.mubr.msk.bf16.gmra.mrb[64].mxu0 %vm547_vm1, %v3320_v26  ;;  %2902 = vmatmul.mubr.msk.bf16.gmra.mrb[64].mxu1 %vm547_vm1, %v3320_v26 }
  0xa7   : > { %859 = vmatprep.mubr.bf16.mxu0 %v3407_v0  ;;  %1212 = vmatprep.mubr.bf16.mxu1 %v3407_v0 }
  0xae   : > { %2870 = vmatmul.mubr.msk.bf16.gmra.mrb[68].mxu0 %vm547_vm1, %v3327_v27  ;;  %2903 = vmatmul.mubr.msk.bf16.gmra.mrb[68].mxu1 %vm547_vm1, %v3327_v27 }
  0xaf   : > { %869 = vmatprep.mubr.bf16.mxu0 %v3407_v0  ;;  %1222 = vmatprep.mubr.bf16.mxu1 %v3407_v0 }
  0xb6   : > { %2871 = vmatmul.mubr.msk.bf16.gmra.mrb[72].mxu0 %vm547_vm1, %v3328_v28  ;;  %2904 = vmatmul.mubr.msk.bf16.gmra.mrb[72].mxu1 %vm547_vm1, %v3328_v28 }
  0xb7   : > { %879 = vmatprep.mubr.bf16.mxu0 %v3407_v0  ;;  %1232 = vmatprep.mubr.bf16.mxu1 %v3407_v0 }
  0xbe   : > { %2872 = vmatmul.mubr.msk.bf16.gmra.mrb[76].mxu0 %vm547_vm1, %v3335_v29  ;;  %2905 = vmatmul.mubr.msk.bf16.gmra.mrb[76].mxu1 %vm547_vm1, %v3335_v29 }
  0xbf   : > { %889 = vmatprep.mubr.bf16.mxu0 %v3407_v0  ;;  %1242 = vmatprep.mubr.bf16.mxu1 %v3407_v0 }
  0xc6   : > { %2873 = vmatmul.mubr.msk.bf16.gmra.mrb[80].mxu0 %vm547_vm1, %v3336_v30  ;;  %2906 = vmatmul.mubr.msk.bf16.gmra.mrb[80].mxu1 %vm547_vm1, %v3336_v30 }
  0xc7   : > { %899 = vmatprep.mubr.bf16.mxu0 %v3407_v0  ;;  %1252 = vmatprep.mubr.bf16.mxu1 %v3407_v0 }
  0xce   : > { %2874 = vmatmul.mubr.msk.bf16.gmra.mrb[84].mxu0 %vm547_vm1, %v3343_v31  ;;  %2907 = vmatmul.mubr.msk.bf16.gmra.mrb[84].mxu1 %vm547_vm1, %v3343_v31 }
  0xcf   : > { %909 = vmatprep.mubr.bf16.mxu0 %v3407_v0  ;;  %1262 = vmatprep.mubr.bf16.mxu1 %v3407_v0 }
  0xd6   : > { %2875 = vmatmul.mubr.msk.bf16.gmra.mrb[88].mxu0 %vm547_vm1, %v3344_v32  ;;  %2908 = vmatmul.mubr.msk.bf16.gmra.mrb[88].mxu1 %vm547_vm1, %v3344_v32  ;;  %v3375_v32 = vld [vmem:[%s3466_s8 + $0xe8] sm:$0xff]  }
  0xd7   : > { %919 = vmatprep.mubr.bf16.mxu0 %v3407_v0  ;;  %1272 = vmatprep.mubr.bf16.mxu1 %v3407_v0 }
  0xde   : > { %2876 = vmatmul.mubr.msk.bf16.gmra.mrb[92].mxu0 %vm547_vm1, %v3351_v33  ;;  %2909 = vmatmul.mubr.msk.bf16.gmra.mrb[92].mxu1 %vm547_vm1, %v3351_v33 }
  0xdf   : > { %929 = vmatprep.mubr.bf16.mxu0 %v3407_v0  ;;  %1282 = vmatprep.mubr.bf16.mxu1 %v3407_v0 }
  0xe6   : > { %2877 = vmatmul.mubr.msk.bf16.gmra.mrb[96].mxu0 %vm547_vm1, %v3352_v34  ;;  %2910 = vmatmul.mubr.msk.bf16.gmra.mrb[96].mxu1 %vm547_vm1, %v3352_v34 }
  0xe7   : > { %939 = vmatprep.mubr.bf16.mxu0 %v3407_v0  ;;  %1292 = vmatprep.mubr.bf16.mxu1 %v3407_v0 }
  0xee   : > { %2878 = vmatmul.mubr.msk.bf16.gmra.mrb[100].mxu0 %vm547_vm1, %v3359_v35  ;;  %2911 = vmatmul.mubr.msk.bf16.gmra.mrb[100].mxu1 %vm547_vm1, %v3359_v35 }
  0xef   : > { %949 = vmatprep.mubr.bf16.mxu0 %v3407_v0  ;;  %1302 = vmatprep.mubr.bf16.mxu1 %v3407_v0 }
  0xf6   : > { %2879 = vmatmul.mubr.msk.bf16.gmra.mrb[104].mxu0 %vm547_vm1, %v3360_v38  ;;  %2912 = vmatmul.mubr.msk.bf16.gmra.mrb[104].mxu1 %vm547_vm1, %v3360_v38 }
  0xf7   : > { %959 = vmatprep.mubr.bf16.mxu0 %v3407_v0  ;;  %1312 = vmatprep.mubr.bf16.mxu1 %v3407_v0 }
  0xf9   : > { %v691_v47 = vpop.f32.mrb[0].mxu0  ;;  %v1044_v48 = vpop.f32.mrb[0].mxu1 }
  0xfa   : > { %v3821_v50 = vadd.f32 %v691_v47, %v3808_v44  ;;  %v693_v51 = vpop.f32.mrb[1].mxu0  ;;  %v1046_v52 = vpop.f32.mrb[1].mxu1  ;;  %v3828_v57 = vadd.f32 %v1044_v48, %v3816_v46 }
  0xfb   : > { %v3825_v54 = vadd.f32 %v693_v51, %v3812_v45  ;;  %v695_v55 = vpop.f32.mrb[2].mxu0  ;;  %v1048_v56 = vpop.f32.mrb[2].mxu1  ;;  %v3837_v62 = vadd.f32 %v1046_v52, %v3818_v49 }
  0xfc   : > { %v3831_v58 = vadd.f32 %v695_v55, %v3808_v44  ;;  %v3834_v59 = vadd.f32 %v1048_v56, %v3816_v46  ;;  %v697_v60 = vpop.f32.mrb[3].mxu0  ;;  %v1050_v61 = vpop.f32.mrb[3].mxu1 }
  0xfd   : > { %v3840_v63 = vadd.f32 %v697_v60, %v3812_v45  ;;  %v3843_v1 = vadd.f32 %v1050_v61, %v3818_v49 }
  0xfe   : > { %v1363_v2 = vpack.c.bf16 %v3831_v58, %v3821_v50  ;;  %v1365_v3 = vpack.c.bf16 %v3834_v59, %v3828_v57  ;;  %2880 = vmatmul.mubr.msk.bf16.gmra.mrb[108].mxu0 %vm547_vm1, %v3367_v53  ;;  %2913 = vmatmul.mubr.msk.bf16.gmra.mrb[108].mxu1 %vm547_vm1, %v3367_v53 }
  0xff   : > { %v1364_v4 = vpack.c.bf16 %v3840_v63, %v3825_v54  ;;  %v1366_v5 = vpack.c.bf16 %v3843_v1, %v3837_v62  ;;  %969 = vmatprep.mubr.bf16.mxu0 %v3407_v0  ;;  %1322 = vmatprep.mubr.bf16.mxu1 %v3407_v0 }
 0x101   : > { %v701_v6 = vpop.f32.mrb[4].mxu0  ;;  %v1054_v7 = vpop.f32.mrb[4].mxu1 }
 0x102   : > { %v3858_v8 = vadd.f32 %v701_v6, %v3808_v44  ;;  %v703_v9 = vpop.f32.mrb[5].mxu0  ;;  %v1056_v10 = vpop.f32.mrb[5].mxu1  ;;  %v3865_v15 = vadd.f32 %v1054_v7, %v3816_v46 }
 0x103   : > { %v3862_v12 = vadd.f32 %v703_v9, %v3812_v45  ;;  %v705_v13 = vpop.f32.mrb[6].mxu0  ;;  %v1058_v14 = vpop.f32.mrb[6].mxu1  ;;  %v3874_v20 = vadd.f32 %v1056_v10, %v3818_v49  ;;  %v3376_v10 = vld [vmem:[%s3466_s8 + $0xf0] sm:$0xff]  }
 0x104   : > { %v3868_v16 = vadd.f32 %v705_v13, %v3808_v44  ;;  %v3871_v17 = vadd.f32 %v1058_v14, %v3816_v46  ;;  %v707_v18 = vpop.f32.mrb[7].mxu0  ;;  %v1060_v19 = vpop.f32.mrb[7].mxu1 }
 0x105   : > { %v3877_v21 = vadd.f32 %v707_v18, %v3812_v45  ;;  %v3880_v22 = vadd.f32 %v1060_v19, %v3818_v49 }
 0x106   : > { %v1367_v23 = vpack.c.bf16 %v3868_v16, %v3858_v8  ;;  %v1369_v24 = vpack.c.bf16 %v3871_v17, %v3865_v15  ;;  %2881 = vmatmul.mubr.msk.bf16.gmra.mrb[112].mxu0 %vm547_vm1, %v3368_v11  ;;  %2914 = vmatmul.mubr.msk.bf16.gmra.mrb[112].mxu1 %vm547_vm1, %v3368_v11 }
 0x107   : > { %v1368_v25 = vpack.c.bf16 %v3877_v21, %v3862_v12  ;;  %v1370_v26 = vpack.c.bf16 %v3880_v22, %v3874_v20  ;;  %979 = vmatprep.mubr.bf16.mxu0 %v3407_v0  ;;  %1332 = vmatprep.mubr.bf16.mxu1 %v3407_v0 }
 0x109   : > { %v711_v27 = vpop.f32.mrb[8].mxu0  ;;  %v1064_v28 = vpop.f32.mrb[8].mxu1 }
 0x10a   : > { %v3895_v29 = vadd.f32 %v711_v27, %v3808_v44  ;;  %v713_v30 = vpop.f32.mrb[9].mxu0  ;;  %v1066_v31 = vpop.f32.mrb[9].mxu1  ;;  %v3902_v36 = vadd.f32 %v1064_v28, %v3816_v46 }
 0x10b   : > { %v3899_v33 = vadd.f32 %v713_v30, %v3812_v45  ;;  %v715_v34 = vpop.f32.mrb[10].mxu0  ;;  %v1068_v35 = vpop.f32.mrb[10].mxu1  ;;  %v3911_v47 = vadd.f32 %v1066_v31, %v3818_v49 }
 0x10c   : > { %v3905_v38 = vadd.f32 %v715_v34, %v3808_v44  ;;  %v3908_v41 = vadd.f32 %v1068_v35, %v3816_v46  ;;  %v717_v42 = vpop.f32.mrb[11].mxu0  ;;  %v1070_v43 = vpop.f32.mrb[11].mxu1 }
 0x10d   : > { %v3914_v48 = vadd.f32 %v717_v42, %v3812_v45  ;;  %v3917_v51 = vadd.f32 %v1070_v43, %v3818_v49 }
 0x10e   : > { %2882 = vmatmul.mubr.msk.bf16.gmra.mrb[116].mxu0 %vm547_vm1, %v3375_v32  ;;  %2915 = vmatmul.mubr.msk.bf16.gmra.mrb[116].mxu1 %vm547_vm1, %v3375_v32 }
 0x10f   : > { %v1372_v55 = vpack.c.bf16 %v3914_v48, %v3899_v33  ;;  %v1374_v56 = vpack.c.bf16 %v3917_v51, %v3911_v47  ;;  %989 = vmatprep.mubr.bf16.mxu0 %v3407_v0  ;;  %1342 = vmatprep.mubr.bf16.mxu1 %v3407_v0 }
 0x111   : > { %v721_v60 = vpop.f32.mrb[12].mxu0  ;;  %v1074_v61 = vpop.f32.mrb[12].mxu1 }
 0x112   : > { %v3932_v6 = vadd.f32 %v721_v60, %v3808_v44  ;;  %v723_v7 = vpop.f32.mrb[13].mxu0  ;;  %v1076_v9 = vpop.f32.mrb[13].mxu1  ;;  %v3939_v18 = vadd.f32 %v1074_v61, %v3816_v46 }
 0x113   : > { %v3936_v11 = vadd.f32 %v723_v7, %v3812_v45  ;;  %v725_v13 = vpop.f32.mrb[14].mxu0  ;;  %v1078_v14 = vpop.f32.mrb[14].mxu1  ;;  %v3948_v31 = vadd.f32 %v1076_v9, %v3818_v49 }
 0x114   : > { %v3942_v19 = vadd.f32 %v725_v13, %v3808_v44  ;;  %v3945_v27 = vadd.f32 %v1078_v14, %v3816_v46  ;;  %v727_v28 = vpop.f32.mrb[15].mxu0  ;;  %v1080_v30 = vpop.f32.mrb[15].mxu1 }
 0x115   : > { %v3951_v32 = vadd.f32 %v727_v28, %v3812_v45  ;;  %v3954_v34 = vadd.f32 %v1080_v30, %v3818_v49  ;;  %v3383_v28 = vld [vmem:[%s3466_s8 + $0xf8] sm:$0xff]  }
 0x116   : > { %2883 = vmatmul.mubr.msk.bf16.gmra.mrb[120].mxu0 %vm547_vm1, %v3376_v10  ;;  %2916 = vmatmul.mubr.msk.bf16.gmra.mrb[120].mxu1 %vm547_vm1, %v3376_v10 }
 0x117   : > { %999 = vmatprep.mubr.bf16.mxu0 %v3407_v0  ;;  %1352 = vmatprep.mubr.bf16.mxu1 %v3407_v0 }
 0x119   : > { %v731_v61 = vpop.f32.mrb[16].mxu0  ;;  %v1084_v7 = vpop.f32.mrb[16].mxu1 }
 0x11a   : > { %v3969_v9 = vadd.f32 %v731_v61, %v3808_v44  ;;  %v733_v13 = vpop.f32.mrb[17].mxu0  ;;  %v1086_v14 = vpop.f32.mrb[17].mxu1  ;;  %v3976_v39 = vadd.f32 %v1084_v7, %v3816_v46 }
 0x11b   : > { %v3973_v10 = vadd.f32 %v733_v13, %v3812_v45  ;;  %v735_v30 = vpop.f32.mrb[18].mxu0  ;;  %v1088_v40 = vpop.f32.mrb[18].mxu1  ;;  %v3985_v60 = vadd.f32 %v1086_v14, %v3818_v49 }
 0x11c   : > { %v3979_v42 = vadd.f32 %v735_v30, %v3808_v44  ;;  %v3982_v0 = vadd.f32 %v1088_v40, %v3816_v46  ;;  %v737_v35 = vpop.f32.mrb[19].mxu0  ;;  %v1090_v61 = vpop.f32.mrb[19].mxu1 }
 0x11d   : > { %v3988_v43 = vadd.f32 %v737_v35, %v3812_v45  ;;  %v3991_v13 = vadd.f32 %v1090_v61, %v3818_v49 }
 0x11e   : > { %2884 = vmatmul.mubr.msk.bf16.gmra.mrb[124].mxu0 %vm547_vm1, %v3383_v28  ;;  %2917 = vmatmul.mubr.msk.bf16.gmra.mrb[124].mxu1 %vm547_vm1, %v3383_v28 }
 0x11f   : > { %1919 = vmatprep.mubr.bf16.mxu1 %v1364_v4  ;;  %2272 = vmatprep.mubr.bf16.mxu0 %v1366_v5 }
 0x121   : > { %v741_v14 = vpop.f32.mrb[20].mxu0  ;;  %v1094_v61 = vpop.f32.mrb[20].mxu1 }
 0x122   : > { %v4010_v30 = vadd.f32 %v741_v14, %v3808_v44  ;;  %v743_v28 = vpop.f32.mrb[21].mxu0  ;;  %v1096_v7 = vpop.f32.mrb[21].mxu1  ;;  %v4016_v52 = vadd.f32 %v1094_v61, %v3816_v46 }
 0x123   : > { %v4013_v40 = vadd.f32 %v743_v28, %v3812_v45  ;;  %v745_v53 = vpop.f32.mrb[22].mxu0  ;;  %v1098_v35 = vpop.f32.mrb[22].mxu1  ;;  %v4025_v4 = vadd.f32 %v1096_v7, %v3818_v49 }
 0x124   : > { %v4019_v54 = vadd.f32 %v745_v53, %v3808_v44  ;;  %v4022_v62 = vadd.f32 %v1098_v35, %v3816_v46  ;;  %v747_v63 = vpop.f32.mrb[23].mxu0  ;;  %v1100_v1 = vpop.f32.mrb[23].mxu1 }
 0x125   : > { %v4028_v5 = vadd.f32 %v747_v63, %v3812_v45  ;;  %v4031_v14 = vadd.f32 %v1100_v1, %v3818_v49 }
 0x126   : > { %v1383_v61 = vpack.c.bf16 %v4019_v54, %v4010_v30  ;;  %v1385_v53 = vpack.c.bf16 %v4022_v62, %v4016_v52  ;;  %1920 = vmatmul.mubr.bf16.vlgmr.msra.gmra.mrb[128].mxu1 %v1363_v2  ;;  %2273 = vmatmul.mubr.bf16.vlgmr.msra.gmra.mrb[128].mxu0 %v1365_v3 }
 0x127   : > { %v1384_v7 = vpack.c.bf16 %v4028_v5, %v4013_v40  ;;  %v1386_v35 = vpack.c.bf16 %v4031_v14, %v4025_v4  ;;  %1929 = vmatprep.mubr.bf16.mxu1 %v1368_v25  ;;  %2282 = vmatprep.mubr.bf16.mxu0 %v1370_v26 }
 0x129   : > { %v751_v50 = vpop.f32.mrb[24].mxu0  ;;  %v1104_v58 = vpop.f32.mrb[24].mxu1 }
 0x12a   : > { %v4054_v2 = vadd.f32 %v751_v50, %v3808_v44  ;;  %v753_v57 = vpop.f32.mrb[25].mxu0  ;;  %v1106_v59 = vpop.f32.mrb[25].mxu1  ;;  %v4060_v1 = vadd.f32 %v1104_v58, %v3816_v46 }
 0x12b   : > { %v4057_v3 = vadd.f32 %v753_v57, %v3812_v45  ;;  %v755_v28 = vpop.f32.mrb[26].mxu0  ;;  %v1108_v63 = vpop.f32.mrb[26].mxu1  ;;  %v4069_v25 = vadd.f32 %v1106_v59, %v3818_v49 }
 0x12c   : > { %v4063_v12 = vadd.f32 %v755_v28, %v3808_v44  ;;  %v4066_v20 = vadd.f32 %v1108_v63, %v3816_v46  ;;  %v757_v21 = vpop.f32.mrb[27].mxu0  ;;  %v1110_v22 = vpop.f32.mrb[27].mxu1 }
 0x12d   : > { %v4072_v26 = vadd.f32 %v757_v21, %v3812_v45  ;;  %v4075_v50 = vadd.f32 %v1110_v22, %v3818_v49 }
 0x12e   : > { %v1387_v58 = vpack.c.bf16 %v4063_v12, %v4054_v2  ;;  %v1389_v57 = vpack.c.bf16 %v4066_v20, %v4060_v1  ;;  %1930 = vmatmul.mubr.bf16.gmra.mrb[132].mxu1 %v1367_v23  ;;  %2283 = vmatmul.mubr.bf16.gmra.mrb[132].mxu0 %v1369_v24 }
 0x12f   : > { %v1388_v59 = vpack.c.bf16 %v4072_v26, %v4057_v3  ;;  %v1390_v28 = vpack.c.bf16 %v4075_v50, %v4069_v25  ;;  %1939 = vmatprep.mubr.bf16.mxu1 %v1372_v55  ;;  %2292 = vmatprep.mubr.bf16.mxu0 %v1374_v56 }
 0x131   : > { %v761_v8 = vpop.f32.mrb[28].mxu0  ;;  %v1114_v16 = vpop.f32.mrb[28].mxu1 }
 0x132   : > { %v4098_v23 = vadd.f32 %v761_v8, %v3808_v44  ;;  %v763_v15 = vpop.f32.mrb[29].mxu0  ;;  %v1116_v17 = vpop.f32.mrb[29].mxu1  ;;  %v4104_v22 = vadd.f32 %v1114_v16, %v3816_v46 }
 0x133   : > { %v4101_v24 = vadd.f32 %v763_v15, %v3812_v45  ;;  %v765_v63 = vpop.f32.mrb[30].mxu0  ;;  %v1118_v21 = vpop.f32.mrb[30].mxu1  ;;  %v4113_v55 = vadd.f32 %v1116_v17, %v3818_v49  ;;  %v5537_v17 = vpack.c.bf16 %v3908_v41, %v3902_v36  ;;  %v5539_v15 = vpack.c.bf16 %v3954_v34, %v3948_v31 }
 0x134   : > { %v4107_v33 = vadd.f32 %v765_v63, %v3808_v44  ;;  %v4110_v47 = vadd.f32 %v1118_v21, %v3816_v46  ;;  %v767_v48 = vpop.f32.mrb[31].mxu0  ;;  %v1120_v51 = vpop.f32.mrb[31].mxu1  ;;  %v5536_v63 = vpack.c.bf16 %v3905_v38, %v3895_v29 }
 0x135   : > { %v4116_v56 = vadd.f32 %v767_v48, %v3812_v45  ;;  %v4119_v8 = vadd.f32 %v1120_v51, %v3818_v49  ;;  %v5538_v51 = vpack.c.bf16 %v3951_v32, %v3936_v11 }
 0x136   : > { %1940 = vmatmul.mubr.bf16.gmra.mrb[136].mxu1 %v5536_v63  ;;  %2293 = vmatmul.mubr.bf16.gmra.mrb[136].mxu0 %v5537_v17 }
 0x137   : > { %1949 = vmatprep.mubr.bf16.mxu1 %v5538_v51  ;;  %2302 = vmatprep.mubr.bf16.mxu0 %v5539_v15 }
 0x139   : > { %v771_v29 = vpop.f32.mrb[32].mxu0  ;;  %v1124_v38 = vpop.f32.mrb[32].mxu1 }
 0x13a   : > { %v4142_v63 = vadd.f32 %v771_v29, %v3808_v44  ;;  %v773_v36 = vpop.f32.mrb[33].mxu0  ;;  %v1126_v41 = vpop.f32.mrb[33].mxu1  ;;  %v4148_v21 = vadd.f32 %v1124_v38, %v3816_v46 }
 0x13b   : > { %v4145_v17 = vadd.f32 %v773_v36, %v3812_v45  ;;  %v775_v16 = vpop.f32.mrb[34].mxu0  ;;  %v1128_v48 = vpop.f32.mrb[34].mxu1  ;;  %v4157_v15 = vadd.f32 %v1126_v41, %v3818_v49  ;;  %v5541_v36 = vpack.c.bf16 %v3945_v27, %v3939_v18 }
 0x13c   : > { %v4151_v11 = vadd.f32 %v775_v16, %v3808_v44  ;;  %v4154_v31 = vadd.f32 %v1128_v48, %v3816_v46  ;;  %v777_v32 = vpop.f32.mrb[35].mxu0  ;;  %v1130_v34 = vpop.f32.mrb[35].mxu1  ;;  %v5540_v48 = vpack.c.bf16 %v3942_v19, %v3932_v6  ;;  %v5543_v16 = vpack.c.bf16 %v3991_v13, %v3985_v60 }
 0x13d   : > { %v4160_v51 = vadd.f32 %v777_v32, %v3812_v45  ;;  %v4163_v29 = vadd.f32 %v1130_v34, %v3818_v49  ;;  %v5542_v34 = vpack.c.bf16 %v3988_v43, %v3973_v10 }
 0x13e   : > { %1950 = vmatmul.mubr.bf16.gmra.mrb[140].mxu1 %v5540_v48  ;;  %2303 = vmatmul.mubr.bf16.gmra.mrb[140].mxu0 %v5541_v36 }
 0x13f   : > { %1959 = vmatprep.mubr.bf16.mxu1 %v5542_v34  ;;  %2312 = vmatprep.mubr.bf16.mxu0 %v5543_v16 }
 0x141   : > { %v781_v6 = vpop.f32.mrb[36].mxu0  ;;  %v1134_v19 = vpop.f32.mrb[36].mxu1 }
 0x142   : > { %v4186_v48 = vadd.f32 %v781_v6, %v3808_v44  ;;  %v783_v18 = vpop.f32.mrb[37].mxu0  ;;  %v1136_v27 = vpop.f32.mrb[37].mxu1  ;;  %v4192_v41 = vadd.f32 %v1134_v19, %v3816_v46 }
 0x143   : > { %v4189_v36 = vadd.f32 %v783_v18, %v3812_v45  ;;  %v785_v38 = vpop.f32.mrb[38].mxu0  ;;  %v1138_v32 = vpop.f32.mrb[38].mxu1  ;;  %v4201_v16 = vadd.f32 %v1136_v27, %v3818_v49  ;;  %v5545_v18 = vpack.c.bf16 %v3982_v0, %v3976_v39 }
 0x144   : > { %v4195_v43 = vadd.f32 %v785_v38, %v3808_v44  ;;  %v4198_v60 = vadd.f32 %v1138_v32, %v3816_v46  ;;  %v787_v10 = vpop.f32.mrb[39].mxu0  ;;  %v1140_v13 = vpop.f32.mrb[39].mxu1  ;;  %v5544_v32 = vpack.c.bf16 %v3979_v42, %v3969_v9 }
 0x145   : > { %v4204_v34 = vadd.f32 %v787_v10, %v3812_v45  ;;  %v4207_v6 = vadd.f32 %v1140_v13, %v3818_v49 }
 0x146   : > { %1960 = vmatmul.mubr.bf16.gmra.mrb[144].mxu1 %v5544_v32  ;;  %2313 = vmatmul.mubr.bf16.gmra.mrb[144].mxu0 %v5545_v18 }
 0x147   : > { %v1400_v27 = vpack.c.bf16 %v4204_v34, %v4189_v36  ;;  %v1402_v10 = vpack.c.bf16 %v4207_v6, %v4201_v16  ;;  %1969 = vmatprep.mubr.bf16.mxu1 %v1384_v7  ;;  %2322 = vmatprep.mubr.bf16.mxu0 %v1386_v35 }
 0x149   : > { %v791_v42 = vpop.f32.mrb[40].mxu0  ;;  %v1144_v9 = vpop.f32.mrb[40].mxu1 }
 0x14a   : > { %v4230_v13 = vadd.f32 %v791_v42, %v3808_v44  ;;  %v793_v39 = vpop.f32.mrb[41].mxu0  ;;  %v1146_v0 = vpop.f32.mrb[41].mxu1  ;;  %v4236_v19 = vadd.f32 %v1144_v9, %v3816_v46 }
 0x14b   : > { %v4233_v32 = vadd.f32 %v793_v39, %v3812_v45  ;;  %v795_v18 = vpop.f32.mrb[42].mxu0  ;;  %v1148_v38 = vpop.f32.mrb[42].mxu1  ;;  %v4245_v7 = vadd.f32 %v1146_v0, %v3818_v49 }
 0x14c   : > { %v4239_v40 = vadd.f32 %v795_v18, %v3808_v44  ;;  %v4242_v4 = vadd.f32 %v1148_v38, %v3816_v46  ;;  %v797_v5 = vpop.f32.mrb[43].mxu0  ;;  %v1150_v14 = vpop.f32.mrb[43].mxu1 }
 0x14d   : > { %v4248_v35 = vadd.f32 %v797_v5, %v3812_v45  ;;  %v4251_v42 = vadd.f32 %v1150_v14, %v3818_v49 }
 0x14e   : > { %v1403_v9 = vpack.c.bf16 %v4239_v40, %v4230_v13  ;;  %v1405_v39 = vpack.c.bf16 %v4242_v4, %v4236_v19  ;;  %1970 = vmatmul.mubr.bf16.gmra.mrb[148].mxu1 %v1383_v61  ;;  %2323 = vmatmul.mubr.bf16.gmra.mrb[148].mxu0 %v1385_v53 }
 0x14f   : > { %v1404_v38 = vpack.c.bf16 %v4248_v35, %v4233_v32  ;;  %v1406_v0 = vpack.c.bf16 %v4251_v42, %v4245_v7  ;;  %1979 = vmatprep.mubr.bf16.mxu1 %v1388_v59  ;;  %2332 = vmatprep.mubr.bf16.mxu0 %v1390_v28 }
 0x151   : > { %v801_v30 = vpop.f32.mrb[44].mxu0  ;;  %v1154_v54 = vpop.f32.mrb[44].mxu1 }
 0x152   : > { %v4274_v61 = vadd.f32 %v801_v30, %v3808_v44  ;;  %v803_v52 = vpop.f32.mrb[45].mxu0  ;;  %v1156_v62 = vpop.f32.mrb[45].mxu1  ;;  %v4280_v14 = vadd.f32 %v1154_v54, %v3816_v46 }
 0x153   : > { %v4277_v53 = vadd.f32 %v803_v52, %v3812_v45  ;;  %v805_v18 = vpop.f32.mrb[46].mxu0  ;;  %v1158_v5 = vpop.f32.mrb[46].mxu1  ;;  %v4289_v59 = vadd.f32 %v1156_v62, %v3818_v49 }
 0x154   : > { %v4283_v3 = vadd.f32 %v805_v18, %v3808_v44  ;;  %v4286_v25 = vadd.f32 %v1158_v5, %v3816_v46  ;;  %v807_v26 = vpop.f32.mrb[47].mxu0  ;;  %v1160_v50 = vpop.f32.mrb[47].mxu1  ;;  %v5546_v5 = vpack.c.bf16 %v4116_v56, %v4101_v24 }
 0x155   : > { %v4292_v28 = vadd.f32 %v807_v26, %v3812_v45  ;;  %v4295_v30 = vadd.f32 %v1160_v50, %v3818_v49  ;;  %v5547_v26 = vpack.c.bf16 %v4119_v8, %v4113_v55 }
 0x156   : > { %1980 = vmatmul.mubr.bf16.gmra.mrb[152].mxu1 %v1387_v58  ;;  %2333 = vmatmul.mubr.bf16.gmra.mrb[152].mxu0 %v1389_v57 }
 0x157   : > { %v1408_v62 = vpack.c.bf16 %v4292_v28, %v4277_v53  ;;  %v1410_v18 = vpack.c.bf16 %v4295_v30, %v4289_v59  ;;  %1989 = vmatprep.mubr.bf16.mxu1 %v5546_v5  ;;  %2342 = vmatprep.mubr.bf16.mxu0 %v5547_v26 }
 0x159   : > { %v811_v2 = vpop.f32.mrb[48].mxu0  ;;  %v1164_v12 = vpop.f32.mrb[48].mxu1 }
 0x15a   : > { %v4318_v58 = vadd.f32 %v811_v2, %v3808_v44  ;;  %v813_v1 = vpop.f32.mrb[49].mxu0  ;;  %v1166_v20 = vpop.f32.mrb[49].mxu1  ;;  %v4324_v54 = vadd.f32 %v1164_v12, %v3816_v46 }
 0x15b   : > { %v4321_v57 = vadd.f32 %v813_v1, %v3812_v45  ;;  %v815_v50 = vpop.f32.mrb[50].mxu0  ;;  %v1168_v52 = vpop.f32.mrb[50].mxu1  ;;  %v4333_v5 = vadd.f32 %v1166_v20, %v3818_v49  ;;  %v5549_v20 = vpack.c.bf16 %v4110_v47, %v4104_v22  ;;  %v5551_v1 = vpack.c.bf16 %v4163_v29, %v4157_v15 }
 0x15c   : > { %v4327_v24 = vadd.f32 %v815_v50, %v3808_v44  ;;  %v4330_v55 = vadd.f32 %v1168_v52, %v3816_v46  ;;  %v817_v56 = vpop.f32.mrb[51].mxu0  ;;  %v1170_v8 = vpop.f32.mrb[51].mxu1  ;;  %v5548_v52 = vpack.c.bf16 %v4107_v33, %v4098_v23 }
 0x15d   : > { %v4336_v26 = vadd.f32 %v817_v56, %v3812_v45  ;;  %v4339_v2 = vadd.f32 %v1170_v8, %v3818_v49  ;;  %v5550_v8 = vpack.c.bf16 %v4160_v51, %v4145_v17 }
 0x15e   : > { %1990 = vmatmul.mubr.bf16.gmra.mrb[156].mxu1 %v5548_v52  ;;  %2343 = vmatmul.mubr.bf16.gmra.mrb[156].mxu0 %v5549_v20 }
 0x15f   : > { %1999 = vmatprep.mubr.bf16.mxu1 %v5550_v8  ;;  %2352 = vmatprep.mubr.bf16.mxu0 %v5551_v1 }
 0x161   : > { %v821_v23 = vpop.f32.mrb[52].mxu0  ;;  %v1174_v33 = vpop.f32.mrb[52].mxu1 }
 0x162   : > { %v4362_v52 = vadd.f32 %v821_v23, %v3808_v44  ;;  %v823_v22 = vpop.f32.mrb[53].mxu0  ;;  %v1176_v47 = vpop.f32.mrb[53].mxu1  ;;  %v4368_v50 = vadd.f32 %v1174_v33, %v3816_v46 }
 0x163   : > { %v4365_v20 = vadd.f32 %v823_v22, %v3812_v45  ;;  %v825_v12 = vpop.f32.mrb[54].mxu0  ;;  %v1178_v56 = vpop.f32.mrb[54].mxu1  ;;  %v4377_v1 = vadd.f32 %v1176_v47, %v3818_v49  ;;  %v5553_v22 = vpack.c.bf16 %v4154_v31, %v4148_v21 }
 0x164   : > { %v4371_v17 = vadd.f32 %v825_v12, %v3808_v44  ;;  %v4374_v15 = vadd.f32 %v1178_v56, %v3816_v46  ;;  %v827_v51 = vpop.f32.mrb[55].mxu0  ;;  %v1180_v29 = vpop.f32.mrb[55].mxu1  ;;  %v5552_v56 = vpack.c.bf16 %v4151_v11, %v4142_v63 }
 0x165   : > { %v4380_v8 = vadd.f32 %v827_v51, %v3812_v45  ;;  %v4383_v23 = vadd.f32 %v1180_v29, %v3818_v49 }
 0x166   : > { %2000 = vmatmul.mubr.bf16.gmra.mrb[160].mxu1 %v5552_v56  ;;  %2353 = vmatmul.mubr.bf16.gmra.mrb[160].mxu0 %v5553_v22 }
 0x167   : > { %v1416_v47 = vpack.c.bf16 %v4380_v8, %v4365_v20  ;;  %v1418_v51 = vpack.c.bf16 %v4383_v23, %v4377_v1  ;;  %2009 = vmatprep.mubr.bf16.mxu1 %v1400_v27  ;;  %2362 = vmatprep.mubr.bf16.mxu0 %v1402_v10 }
 0x169   : > { %v831_v63 = vpop.f32.mrb[56].mxu0  ;;  %v1184_v11 = vpop.f32.mrb[56].mxu1 }
 0x16a   : > { %v4406_v29 = vadd.f32 %v831_v63, %v3808_v44  ;;  %v833_v21 = vpop.f32.mrb[57].mxu0  ;;  %v1186_v31 = vpop.f32.mrb[57].mxu1  ;;  %v4412_v33 = vadd.f32 %v1184_v11, %v3816_v46 }
 0x16b   : > { %v4409_v56 = vadd.f32 %v833_v21, %v3812_v45  ;;  %v835_v22 = vpop.f32.mrb[58].mxu0  ;;  %v1188_v12 = vpop.f32.mrb[58].mxu1  ;;  %v4421_v27 = vadd.f32 %v1186_v31, %v3818_v49  ;;  %v5555_v31 = vpack.c.bf16 %v4198_v60, %v4192_v41 }
 0x16c   : > { %v4415_v36 = vadd.f32 %v835_v22, %v3808_v44  ;;  %v4418_v16 = vadd.f32 %v1188_v12, %v3816_v46  ;;  %v837_v34 = vpop.f32.mrb[59].mxu0  ;;  %v1190_v6 = vpop.f32.mrb[59].mxu1  ;;  %v5554_v12 = vpack.c.bf16 %v4195_v43, %v4186_v48 }
 0x16d   : > { %v4424_v10 = vadd.f32 %v837_v34, %v3812_v45  ;;  %v4427_v63 = vadd.f32 %v1190_v6, %v3818_v49 }
 0x16e   : > { %2010 = vmatmul.mubr.bf16.gmra.mrb[164].mxu1 %v5554_v12  ;;  %2363 = vmatmul.mubr.bf16.gmra.mrb[164].mxu0 %v5555_v31 }
 0x16f   : > { %v1420_v22 = vpack.c.bf16 %v4424_v10, %v4409_v56  ;;  %v1422_v34 = vpack.c.bf16 %v4427_v63, %v4421_v27  ;;  %2019 = vmatprep.mubr.bf16.mxu1 %v1404_v38  ;;  %2372 = vmatprep.mubr.bf16.mxu0 %v1406_v0 }
 0x171   : > { %v841_v48 = vpop.f32.mrb[60].mxu0  ;;  %v1194_v43 = vpop.f32.mrb[60].mxu1 }
 0x172   : > { %v4450_v6 = vadd.f32 %v841_v48, %v3808_v44  ;;  %v843_v41 = vpop.f32.mrb[61].mxu0  ;;  %v1196_v60 = vpop.f32.mrb[61].mxu1  ;;  %v4456_v11 = vadd.f32 %v1194_v43, %v3816_v46 }
 0x173   : > { %v4453_v12 = vadd.f32 %v843_v41, %v3812_v45  ;;  %v845_v31 = vpop.f32.mrb[62].mxu0  ;;  %v1198_v21 = vpop.f32.mrb[62].mxu1  ;;  %v4465_v38 = vadd.f32 %v1196_v60, %v3818_v49 }
 0x174   : > { %v4459_v32 = vadd.f32 %v845_v31, %v3808_v44  ;;  %v4462_v7 = vadd.f32 %v1198_v21, %v3816_v46  ;;  %v847_v35 = vpop.f32.mrb[63].mxu0  ;;  %v1200_v42 = vpop.f32.mrb[63].mxu1 }
 0x175   : > { %v4468_v0 = vadd.f32 %v847_v35, %v3812_v45  ;;  %v4471_v48 = vadd.f32 %v1200_v42, %v3818_v49 }
 0x176   : > { %v1423_v43 = vpack.c.bf16 %v4459_v32, %v4450_v6  ;;  %v1425_v41 = vpack.c.bf16 %v4462_v7, %v4456_v11  ;;  %2020 = vmatmul.mubr.bf16.gmra.mrb[168].mxu1 %v1403_v9  ;;  %2373 = vmatmul.mubr.bf16.gmra.mrb[168].mxu0 %v1405_v39 }
 0x177   : > { %v1424_v21 = vpack.c.bf16 %v4468_v0, %v4453_v12  ;;  %v1426_v60 = vpack.c.bf16 %v4471_v48, %v4465_v38  ;;  %2029 = vmatprep.mubr.bf16.mxu1 %v1408_v62  ;;  %2382 = vmatprep.mubr.bf16.mxu0 %v1410_v18 }
 0x179   : > { %v851_v13 = vpop.f32.mrb[64].mxu0  ;;  %v1204_v40 = vpop.f32.mrb[64].mxu1 }
 0x17a   : > { %v4494_v9 = vadd.f32 %v851_v13, %v3808_v44  ;;  %v853_v19 = vpop.f32.mrb[65].mxu0  ;;  %v1206_v4 = vpop.f32.mrb[65].mxu1  ;;  %v4500_v42 = vadd.f32 %v1204_v40, %v3816_v46 }
 0x17b   : > { %v4497_v39 = vadd.f32 %v853_v19, %v3812_v45  ;;  %v855_v31 = vpop.f32.mrb[66].mxu0  ;;  %v1208_v35 = vpop.f32.mrb[66].mxu1  ;;  %v4509_v62 = vadd.f32 %v1206_v4, %v3818_v49  ;;  %v5557_v4 = vpack.c.bf16 %v4286_v25, %v4280_v14  ;;  %v5559_v19 = vpack.c.bf16 %v4339_v2, %v4333_v5 }
 0x17c   : > { %v4503_v53 = vadd.f32 %v855_v31, %v3808_v44  ;;  %v4506_v59 = vadd.f32 %v1208_v35, %v3816_v46  ;;  %v857_v28 = vpop.f32.mrb[67].mxu0  ;;  %v1210_v30 = vpop.f32.mrb[67].mxu1  ;;  %v5556_v31 = vpack.c.bf16 %v4283_v3, %v4274_v61 }
 0x17d   : > { %v4512_v18 = vadd.f32 %v857_v28, %v3812_v45  ;;  %v4515_v13 = vadd.f32 %v1210_v30, %v3818_v49  ;;  %v5558_v30 = vpack.c.bf16 %v4336_v26, %v4321_v57 }
 0x17e   : > { %2030 = vmatmul.mubr.bf16.gmra.mrb[172].mxu1 %v5556_v31  ;;  %2383 = vmatmul.mubr.bf16.gmra.mrb[172].mxu0 %v5557_v4 }
 0x17f   : > { %2039 = vmatprep.mubr.bf16.mxu1 %v5558_v30  ;;  %2392 = vmatprep.mubr.bf16.mxu0 %v5559_v19 }
 0x181   : > { %v861_v61 = vpop.f32.mrb[68].mxu0  ;;  %v1214_v3 = vpop.f32.mrb[68].mxu1 }
 0x182   : > { %v4538_v31 = vadd.f32 %v861_v61, %v3808_v44  ;;  %v863_v14 = vpop.f32.mrb[69].mxu0  ;;  %v1216_v25 = vpop.f32.mrb[69].mxu1  ;;  %v4544_v35 = vadd.f32 %v1214_v3, %v3816_v46 }
 0x183   : > { %v4541_v4 = vadd.f32 %v863_v14, %v3812_v45  ;;  %v865_v40 = vpop.f32.mrb[70].mxu0  ;;  %v1218_v28 = vpop.f32.mrb[70].mxu1  ;;  %v4553_v19 = vadd.f32 %v1216_v25, %v3818_v49  ;;  %v5561_v14 = vpack.c.bf16 %v4330_v55, %v4324_v54 }
 0x184   : > { %v4547_v57 = vadd.f32 %v865_v40, %v3808_v44  ;;  %v4550_v5 = vadd.f32 %v1218_v28, %v3816_v46  ;;  %v867_v26 = vpop.f32.mrb[71].mxu0  ;;  %v1220_v2 = vpop.f32.mrb[71].mxu1  ;;  %v5560_v28 = vpack.c.bf16 %v4327_v24, %v4318_v58 }
 0x185   : > { %v4556_v30 = vadd.f32 %v867_v26, %v3812_v45  ;;  %v4559_v61 = vadd.f32 %v1220_v2, %v3818_v49 }
 0x186   : > { %2040 = vmatmul.mubr.bf16.gmra.mrb[176].mxu1 %v5560_v28  ;;  %2393 = vmatmul.mubr.bf16.gmra.mrb[176].mxu0 %v5561_v14 }
 0x187   : > { %v1432_v25 = vpack.c.bf16 %v4556_v30, %v4541_v4  ;;  %v1434_v26 = vpack.c.bf16 %v4559_v61, %v4553_v19  ;;  %2049 = vmatprep.mubr.bf16.mxu1 %v1416_v47  ;;  %2402 = vmatprep.mubr.bf16.mxu0 %v1418_v51 }
 0x189   : > { %v871_v58 = vpop.f32.mrb[72].mxu0  ;;  %v1224_v24 = vpop.f32.mrb[72].mxu1 }
 0x18a   : > { %v4582_v2 = vadd.f32 %v871_v58, %v3808_v44  ;;  %v873_v54 = vpop.f32.mrb[73].mxu0  ;;  %v1226_v55 = vpop.f32.mrb[73].mxu1  ;;  %v4588_v3 = vadd.f32 %v1224_v24, %v3816_v46 }
 0x18b   : > { %v4585_v28 = vadd.f32 %v873_v54, %v3812_v45  ;;  %v875_v14 = vpop.f32.mrb[74].mxu0  ;;  %v1228_v40 = vpop.f32.mrb[74].mxu1  ;;  %v4597_v47 = vadd.f32 %v1226_v55, %v3818_v49  ;;  %v5563_v55 = vpack.c.bf16 %v4374_v15, %v4368_v50 }
 0x18c   : > { %v4591_v20 = vadd.f32 %v875_v14, %v3808_v44  ;;  %v4594_v1 = vadd.f32 %v1228_v40, %v3816_v46  ;;  %v877_v8 = vpop.f32.mrb[75].mxu0  ;;  %v1230_v23 = vpop.f32.mrb[75].mxu1  ;;  %v5562_v40 = vpack.c.bf16 %v4371_v17, %v4362_v52 }
 0x18d   : > { %v4600_v51 = vadd.f32 %v877_v8, %v3812_v45  ;;  %v4603_v58 = vadd.f32 %v1230_v23, %v3818_v49 }
 0x18e   : > { %2050 = vmatmul.mubr.bf16.gmra.mrb[180].mxu1 %v5562_v40  ;;  %2403 = vmatmul.mubr.bf16.gmra.mrb[180].mxu0 %v5563_v55 }
 0x18f   : > { %v1436_v14 = vpack.c.bf16 %v4600_v51, %v4585_v28  ;;  %v1438_v8 = vpack.c.bf16 %v4603_v58, %v4597_v47  ;;  %2059 = vmatprep.mubr.bf16.mxu1 %v1420_v22  ;;  %2412 = vmatprep.mubr.bf16.mxu0 %v1422_v34 }
 0x191   : > { %v881_v52 = vpop.f32.mrb[76].mxu0  ;;  %v1234_v17 = vpop.f32.mrb[76].mxu1 }
 0x192   : > { %v4626_v23 = vadd.f32 %v881_v52, %v3808_v44  ;;  %v883_v50 = vpop.f32.mrb[77].mxu0  ;;  %v1236_v15 = vpop.f32.mrb[77].mxu1  ;;  %v4632_v24 = vadd.f32 %v1234_v17, %v3816_v46 }
 0x193   : > { %v4629_v40 = vadd.f32 %v883_v50, %v3812_v45  ;;  %v885_v55 = vpop.f32.mrb[78].mxu0  ;;  %v1238_v54 = vpop.f32.mrb[78].mxu1  ;;  %v4641_v22 = vadd.f32 %v1236_v15, %v3818_v49  ;;  %v5565_v15 = vpack.c.bf16 %v4418_v16, %v4412_v33 }
 0x194   : > { %v4635_v56 = vadd.f32 %v885_v55, %v3808_v44  ;;  %v4638_v27 = vadd.f32 %v1238_v54, %v3816_v46  ;;  %v887_v10 = vpop.f32.mrb[79].mxu0  ;;  %v1240_v63 = vpop.f32.mrb[79].mxu1  ;;  %v5564_v54 = vpack.c.bf16 %v4415_v36, %v4406_v29 }
 0x195   : > { %v4644_v34 = vadd.f32 %v887_v10, %v3812_v45  ;;  %v4647_v52 = vadd.f32 %v1240_v63, %v3818_v49 }
 0x196   : > { %2060 = vmatmul.mubr.bf16.gmra.mrb[184].mxu1 %v5564_v54  ;;  %2413 = vmatmul.mubr.bf16.gmra.mrb[184].mxu0 %v5565_v15 }
 0x197   : > { %v1440_v55 = vpack.c.bf16 %v4644_v34, %v4629_v40  ;;  %v1442_v10 = vpack.c.bf16 %v4647_v52, %v4641_v22  ;;  %2069 = vmatprep.mubr.bf16.mxu1 %v1424_v21  ;;  %2422 = vmatprep.mubr.bf16.mxu0 %v1426_v60 }
 0x199   : > { %v891_v29 = vpop.f32.mrb[80].mxu0  ;;  %v1244_v36 = vpop.f32.mrb[80].mxu1 }
 0x19a   : > { %v4670_v63 = vadd.f32 %v891_v29, %v3808_v44  ;;  %v893_v33 = vpop.f32.mrb[81].mxu0  ;;  %v1246_v16 = vpop.f32.mrb[81].mxu1  ;;  %v4676_v17 = vadd.f32 %v1244_v36, %v3816_v46 }
 0x19b   : > { %v4673_v54 = vadd.f32 %v893_v33, %v3812_v45  ;;  %v895_v15 = vpop.f32.mrb[82].mxu0  ;;  %v1248_v50 = vpop.f32.mrb[82].mxu1  ;;  %v4685_v21 = vadd.f32 %v1246_v16, %v3818_v49 }
 0x19c   : > { %v4679_v12 = vadd.f32 %v895_v15, %v3808_v44  ;;  %v4682_v38 = vadd.f32 %v1248_v50, %v3816_v46  ;;  %v897_v0 = vpop.f32.mrb[83].mxu0  ;;  %v1250_v48 = vpop.f32.mrb[83].mxu1  ;;  %v5566_v15 = vpack.c.bf16 %v4512_v18, %v4497_v39 }
 0x19d   : > { %v4688_v60 = vadd.f32 %v897_v0, %v3812_v45  ;;  %v4691_v29 = vadd.f32 %v1250_v48, %v3818_v49  ;;  %v5567_v0 = vpack.c.bf16 %v4515_v13, %v4509_v62 }
 0x19e   : > { %2070 = vmatmul.mubr.bf16.gmra.mrb[188].mxu1 %v1423_v43  ;;  %2423 = vmatmul.mubr.bf16.gmra.mrb[188].mxu0 %v1425_v41 }
 0x19f   : > { %v1444_v50 = vpack.c.bf16 %v4688_v60, %v4673_v54  ;;  %v1446_v16 = vpack.c.bf16 %v4691_v29, %v4685_v21  ;;  %2079 = vmatprep.mubr.bf16.mxu1 %v5566_v15  ;;  %2432 = vmatprep.mubr.bf16.mxu0 %v5567_v0 }
 0x1a1   : > { %v901_v6 = vpop.f32.mrb[84].mxu0  ;;  %v1254_v32 = vpop.f32.mrb[84].mxu1 }
 0x1a2   : > { %v4714_v43 = vadd.f32 %v901_v6, %v3808_v44  ;;  %v903_v11 = vpop.f32.mrb[85].mxu0  ;;  %v1256_v7 = vpop.f32.mrb[85].mxu1  ;;  %v4720_v36 = vadd.f32 %v1254_v32, %v3816_v46 }
 0x1a3   : > { %v4717_v41 = vadd.f32 %v903_v11, %v3812_v45  ;;  %v905_v48 = vpop.f32.mrb[86].mxu0  ;;  %v1258_v33 = vpop.f32.mrb[86].mxu1  ;;  %v4729_v15 = vadd.f32 %v1256_v7, %v3818_v49  ;;  %v5569_v7 = vpack.c.bf16 %v4506_v59, %v4500_v42 }
 0x1a4   : > { %v4723_v39 = vadd.f32 %v905_v48, %v3808_v44  ;;  %v4726_v62 = vadd.f32 %v1258_v33, %v3816_v46  ;;  %v907_v18 = vpop.f32.mrb[87].mxu0  ;;  %v1260_v13 = vpop.f32.mrb[87].mxu1  ;;  %v5568_v33 = vpack.c.bf16 %v4503_v53, %v4494_v9 }
 0x1a5   : > { %v4732_v0 = vadd.f32 %v907_v18, %v3812_v45  ;;  %v4735_v6 = vadd.f32 %v1260_v13, %v3818_v49 }
 0x1a6   : > { %2080 = vmatmul.mubr.bf16.gmra.mrb[192].mxu1 %v5568_v33  ;;  %2433 = vmatmul.mubr.bf16.gmra.mrb[192].mxu0 %v5569_v7 }
 0x1a7   : > { %v1448_v48 = vpack.c.bf16 %v4732_v0, %v4717_v41  ;;  %v1450_v18 = vpack.c.bf16 %v4735_v6, %v4729_v15  ;;  %2089 = vmatprep.mubr.bf16.mxu1 %v1432_v25  ;;  %2442 = vmatprep.mubr.bf16.mxu0 %v1434_v26 }
 0x1a9   : > { %v911_v9 = vpop.f32.mrb[88].mxu0  ;;  %v1264_v53 = vpop.f32.mrb[88].mxu1 }
 0x1aa   : > { %v4758_v13 = vadd.f32 %v911_v9, %v3808_v44  ;;  %v913_v42 = vpop.f32.mrb[89].mxu0  ;;  %v1266_v59 = vpop.f32.mrb[89].mxu1  ;;  %v4764_v32 = vadd.f32 %v1264_v53, %v3816_v46 }
 0x1ab   : > { %v4761_v33 = vadd.f32 %v913_v42, %v3812_v45  ;;  %v915_v7 = vpop.f32.mrb[90].mxu0  ;;  %v1268_v11 = vpop.f32.mrb[90].mxu1  ;;  %v4773_v25 = vadd.f32 %v1266_v59, %v3818_v49  ;;  %v5571_v59 = vpack.c.bf16 %v4550_v5, %v4544_v35 }
 0x1ac   : > { %v4767_v4 = vadd.f32 %v915_v7, %v3808_v44  ;;  %v4770_v19 = vadd.f32 %v1268_v11, %v3816_v46  ;;  %v917_v30 = vpop.f32.mrb[91].mxu0  ;;  %v1270_v61 = vpop.f32.mrb[91].mxu1  ;;  %v5570_v11 = vpack.c.bf16 %v4547_v57, %v4538_v31 }
 0x1ad   : > { %v4776_v26 = vadd.f32 %v917_v30, %v3812_v45  ;;  %v4779_v9 = vadd.f32 %v1270_v61, %v3818_v49 }
 0x1ae   : > { %2090 = vmatmul.mubr.bf16.gmra.mrb[196].mxu1 %v5570_v11  ;;  %2443 = vmatmul.mubr.bf16.gmra.mrb[196].mxu0 %v5571_v59 }
 0x1af   : > { %v1452_v7 = vpack.c.bf16 %v4776_v26, %v4761_v33  ;;  %v1454_v30 = vpack.c.bf16 %v4779_v9, %v4773_v25  ;;  %2099 = vmatprep.mubr.bf16.mxu1 %v1436_v14  ;;  %2452 = vmatprep.mubr.bf16.mxu0 %v1438_v8 }
 0x1b1   : > { %v921_v31 = vpop.f32.mrb[92].mxu0  ;;  %v1274_v57 = vpop.f32.mrb[92].mxu1 }
 0x1b2   : > { %v4802_v61 = vadd.f32 %v921_v31, %v3808_v44  ;;  %v923_v35 = vpop.f32.mrb[93].mxu0  ;;  %v1276_v5 = vpop.f32.mrb[93].mxu1  ;;  %v4808_v53 = vadd.f32 %v1274_v57, %v3816_v46 }
 0x1b3   : > { %v4805_v11 = vadd.f32 %v923_v35, %v3812_v45  ;;  %v925_v59 = vpop.f32.mrb[94].mxu0  ;;  %v1278_v42 = vpop.f32.mrb[94].mxu1  ;;  %v4817_v14 = vadd.f32 %v1276_v5, %v3818_v49  ;;  %v5573_v5 = vpack.c.bf16 %v4594_v1, %v4588_v3 }
 0x1b4   : > { %v4811_v28 = vadd.f32 %v925_v59, %v3808_v44  ;;  %v4814_v47 = vadd.f32 %v1278_v42, %v3816_v46  ;;  %v927_v51 = vpop.f32.mrb[95].mxu0  ;;  %v1280_v58 = vpop.f32.mrb[95].mxu1  ;;  %v5572_v42 = vpack.c.bf16 %v4591_v20, %v4582_v2 }
 0x1b5   : > { %v4820_v8 = vadd.f32 %v927_v51, %v3812_v45  ;;  %v4823_v31 = vadd.f32 %v1280_v58, %v3818_v49 }
 0x1b6   : > { %2100 = vmatmul.mubr.bf16.gmra.mrb[200].mxu1 %v5572_v42  ;;  %2453 = vmatmul.mubr.bf16.gmra.mrb[200].mxu0 %v5573_v5 }
 0x1b7   : > { %v1456_v59 = vpack.c.bf16 %v4820_v8, %v4805_v11  ;;  %v1458_v51 = vpack.c.bf16 %v4823_v31, %v4817_v14  ;;  %2109 = vmatprep.mubr.bf16.mxu1 %v1440_v55  ;;  %2462 = vmatprep.mubr.bf16.mxu0 %v1442_v10 }
 0x1b9   : > { %v931_v2 = vpop.f32.mrb[96].mxu0  ;;  %v1284_v20 = vpop.f32.mrb[96].mxu1 }
 0x1ba   : > { %v4846_v58 = vadd.f32 %v931_v2, %v3808_v44  ;;  %v933_v3 = vpop.f32.mrb[97].mxu0  ;;  %v1286_v1 = vpop.f32.mrb[97].mxu1  ;;  %v4852_v57 = vadd.f32 %v1284_v20, %v3816_v46 }
 0x1bb   : > { %v4849_v42 = vadd.f32 %v933_v3, %v3812_v45  ;;  %v935_v5 = vpop.f32.mrb[98].mxu0  ;;  %v1288_v35 = vpop.f32.mrb[98].mxu1  ;;  %v4861_v55 = vadd.f32 %v1286_v1, %v3818_v49  ;;  %v5575_v1 = vpack.c.bf16 %v4638_v27, %v4632_v24 }
 0x1bc   : > { %v4855_v40 = vadd.f32 %v935_v5, %v3808_v44  ;;  %v4858_v22 = vadd.f32 %v1288_v35, %v3816_v46  ;;  %v937_v34 = vpop.f32.mrb[99].mxu0  ;;  %v1290_v52 = vpop.f32.mrb[99].mxu1  ;;  %v5574_v35 = vpack.c.bf16 %v4635_v56, %v4626_v23 }
 0x1bd   : > { %v4864_v10 = vadd.f32 %v937_v34, %v3812_v45  ;;  %v4867_v2 = vadd.f32 %v1290_v52, %v3818_v49 }
 0x1be   : > { %2110 = vmatmul.mubr.bf16.gmra.mrb[204].mxu1 %v5574_v35  ;;  %2463 = vmatmul.mubr.bf16.gmra.mrb[204].mxu0 %v5575_v1 }
 0x1bf   : > { %v1460_v5 = vpack.c.bf16 %v4864_v10, %v4849_v42  ;;  %v1462_v34 = vpack.c.bf16 %v4867_v2, %v4861_v55  ;;  %2119 = vmatprep.mubr.bf16.mxu1 %v1444_v50  ;;  %2472 = vmatprep.mubr.bf16.mxu0 %v1446_v16 }
 0x1c1   : > { %v941_v23 = vpop.f32.mrb[100].mxu0  ;;  %v1294_v56 = vpop.f32.mrb[100].mxu1 }
 0x1c2   : > { %v4890_v52 = vadd.f32 %v941_v23, %v3808_v44  ;;  %v943_v24 = vpop.f32.mrb[101].mxu0  ;;  %v1296_v27 = vpop.f32.mrb[101].mxu1  ;;  %v4896_v20 = vadd.f32 %v1294_v56, %v3816_v46 }
 0x1c3   : > { %v4893_v35 = vadd.f32 %v943_v24, %v3812_v45  ;;  %v945_v1 = vpop.f32.mrb[102].mxu0  ;;  %v1298_v3 = vpop.f32.mrb[102].mxu1  ;;  %v4905_v50 = vadd.f32 %v1296_v27, %v3818_v49  ;;  %v5577_v27 = vpack.c.bf16 %v4682_v38, %v4676_v17 }
 0x1c4   : > { %v4899_v54 = vadd.f32 %v945_v1, %v3808_v44  ;;  %v4902_v21 = vadd.f32 %v1298_v3, %v3816_v46  ;;  %v947_v60 = vpop.f32.mrb[103].mxu0  ;;  %v1300_v29 = vpop.f32.mrb[103].mxu1  ;;  %v5576_v3 = vpack.c.bf16 %v4679_v12, %v4670_v63 }
 0x1c5   : > { %v4908_v16 = vadd.f32 %v947_v60, %v3812_v45  ;;  %v4911_v23 = vadd.f32 %v1300_v29, %v3818_v49 }
 0x1c6   : > { %2120 = vmatmul.mubr.bf16.gmra.mrb[208].mxu1 %v5576_v3  ;;  %2473 = vmatmul.mubr.bf16.gmra.mrb[208].mxu0 %v5577_v27 }
 0x1c7   : > { %v1464_v1 = vpack.c.bf16 %v4908_v16, %v4893_v35  ;;  %v1466_v60 = vpack.c.bf16 %v4911_v23, %v4905_v50  ;;  %2129 = vmatprep.mubr.bf16.mxu1 %v1448_v48  ;;  %2482 = vmatprep.mubr.bf16.mxu0 %v1450_v18 }
 0x1c9   : > { %v951_v63 = vpop.f32.mrb[104].mxu0  ;;  %v1304_v12 = vpop.f32.mrb[104].mxu1 }
 0x1ca   : > { %v4934_v29 = vadd.f32 %v951_v63, %v3808_v44  ;;  %v953_v17 = vpop.f32.mrb[105].mxu0  ;;  %v1306_v38 = vpop.f32.mrb[105].mxu1  ;;  %v4940_v56 = vadd.f32 %v1304_v12, %v3816_v46 }
 0x1cb   : > { %v4937_v3 = vadd.f32 %v953_v17, %v3812_v45  ;;  %v955_v27 = vpop.f32.mrb[106].mxu0  ;;  %v1308_v24 = vpop.f32.mrb[106].mxu1  ;;  %v4949_v48 = vadd.f32 %v1306_v38, %v3818_v49  ;;  %v5579_v38 = vpack.c.bf16 %v4726_v62, %v4720_v36 }
 0x1cc   : > { %v4943_v41 = vadd.f32 %v955_v27, %v3808_v44  ;;  %v4946_v15 = vadd.f32 %v1308_v24, %v3816_v46  ;;  %v957_v0 = vpop.f32.mrb[107].mxu0  ;;  %v1310_v6 = vpop.f32.mrb[107].mxu1  ;;  %v5578_v24 = vpack.c.bf16 %v4723_v39, %v4714_v43 }
 0x1cd   : > { %v4952_v18 = vadd.f32 %v957_v0, %v3812_v45  ;;  %v4955_v63 = vadd.f32 %v1310_v6, %v3818_v49 }
 0x1ce   : > { %2130 = vmatmul.mubr.bf16.gmra.mrb[212].mxu1 %v5578_v24  ;;  %2483 = vmatmul.mubr.bf16.gmra.mrb[212].mxu0 %v5579_v38 }
 0x1cf   : > { %v1468_v27 = vpack.c.bf16 %v4952_v18, %v4937_v3  ;;  %v1470_v0 = vpack.c.bf16 %v4955_v63, %v4949_v48  ;;  %2139 = vmatprep.mubr.bf16.mxu1 %v1452_v7  ;;  %2492 = vmatprep.mubr.bf16.mxu0 %v1454_v30  ;;  %v1555_v3 = vld [vmem:[%s5532_s5] sm:$0x3] }
 0x1d1   : > { %v961_v43 = vpop.f32.mrb[108].mxu0  ;;  %v1314_v39 = vpop.f32.mrb[108].mxu1 }
 0x1d2   : > { %v4978_v6 = vadd.f32 %v961_v43, %v3808_v44  ;;  %v963_v36 = vpop.f32.mrb[109].mxu0  ;;  %v1316_v62 = vpop.f32.mrb[109].mxu1  ;;  %v4984_v12 = vadd.f32 %v1314_v39, %v3816_v46 }
 0x1d3   : > { %v4981_v24 = vadd.f32 %v963_v36, %v3812_v45  ;;  %v965_v38 = vpop.f32.mrb[110].mxu0  ;;  %v1318_v17 = vpop.f32.mrb[110].mxu1  ;;  %v4993_v7 = vadd.f32 %v1316_v62, %v3818_v49  ;;  %v5581_v62 = vpack.c.bf16 %v4770_v19, %v4764_v32 }
 0x1d4   : > { %v4987_v33 = vadd.f32 %v965_v38, %v3808_v44  ;;  %v4990_v25 = vadd.f32 %v1318_v17, %v3816_v46  ;;  %v967_v26 = vpop.f32.mrb[111].mxu0  ;;  %v1320_v9 = vpop.f32.mrb[111].mxu1  ;;  %v5580_v17 = vpack.c.bf16 %v4767_v4, %v4758_v13 }
 0x1d5   : > { %v4996_v30 = vadd.f32 %v967_v26, %v3812_v45  ;;  %v4999_v43 = vadd.f32 %v1320_v9, %v3818_v49 }
 0x1d6   : > { %2140 = vmatmul.mubr.bf16.gmra.mrb[216].mxu1 %v5580_v17  ;;  %2493 = vmatmul.mubr.bf16.gmra.mrb[216].mxu0 %v5581_v62 }
 0x1d7   : > { %v1472_v38 = vpack.c.bf16 %v4996_v30, %v4981_v24  ;;  %v1474_v26 = vpack.c.bf16 %v4999_v43, %v4993_v7  ;;  %2149 = vmatprep.mubr.bf16.mxu1 %v1456_v59  ;;  %2502 = vmatprep.mubr.bf16.mxu0 %v1458_v51 }
 0x1d9   : > { %v971_v13 = vpop.f32.mrb[112].mxu0  ;;  %v1324_v4 = vpop.f32.mrb[112].mxu1 }
 0x1da   : > { %v5022_v9 = vadd.f32 %v971_v13, %v3808_v44  ;;  %v973_v32 = vpop.f32.mrb[113].mxu0  ;;  %v1326_v19 = vpop.f32.mrb[113].mxu1  ;;  %v5028_v39 = vadd.f32 %v1324_v4, %v3816_v46 }
 0x1db   : > { %v5025_v17 = vadd.f32 %v973_v32, %v3812_v45  ;;  %v975_v62 = vpop.f32.mrb[114].mxu0  ;;  %v1328_v36 = vpop.f32.mrb[114].mxu1  ;;  %v5037_v59 = vadd.f32 %v1326_v19, %v3818_v49  ;;  %v5583_v19 = vpack.c.bf16 %v4814_v47, %v4808_v53 }
 0x1dc   : > { %v5031_v11 = vadd.f32 %v975_v62, %v3808_v44  ;;  %v5034_v14 = vadd.f32 %v1328_v36, %v3816_v46  ;;  %v977_v8 = vpop.f32.mrb[115].mxu0  ;;  %v1330_v31 = vpop.f32.mrb[115].mxu1  ;;  %v5582_v36 = vpack.c.bf16 %v4811_v28, %v4802_v61 }
 0x1dd   : > { %v5040_v51 = vadd.f32 %v977_v8, %v3812_v45  ;;  %v5043_v13 = vadd.f32 %v1330_v31, %v3818_v49 }
 0x1de   : > { %2150 = vmatmul.mubr.bf16.gmra.mrb[220].mxu1 %v5582_v36  ;;  %2503 = vmatmul.mubr.bf16.gmra.mrb[220].mxu0 %v5583_v19 }
 0x1df   : > { %v1476_v62 = vpack.c.bf16 %v5040_v51, %v5025_v17  ;;  %v1478_v8 = vpack.c.bf16 %v5043_v13, %v5037_v59  ;;  %2159 = vmatprep.mubr.bf16.mxu1 %v1460_v5  ;;  %2512 = vmatprep.mubr.bf16.mxu0 %v1462_v34 }
 0x1e1   : > { %v981_v61 = vpop.f32.mrb[116].mxu0  ;;  %v1334_v28 = vpop.f32.mrb[116].mxu1 }
 0x1e2   : > { %v5066_v31 = vadd.f32 %v981_v61, %v3808_v44  ;;  %v983_v53 = vpop.f32.mrb[117].mxu0  ;;  %v1336_v47 = vpop.f32.mrb[117].mxu1  ;;  %v5072_v4 = vadd.f32 %v1334_v28, %v3816_v46 }
 0x1e3   : > { %v5069_v36 = vadd.f32 %v983_v53, %v3812_v45  ;;  %v985_v19 = vpop.f32.mrb[118].mxu0  ;;  %v1338_v32 = vpop.f32.mrb[118].mxu1  ;;  %v5081_v5 = vadd.f32 %v1336_v47, %v3818_v49  ;;  %v5585_v47 = vpack.c.bf16 %v4858_v22, %v4852_v57 }
 0x1e4   : > { %v5075_v42 = vadd.f32 %v985_v19, %v3808_v44  ;;  %v5078_v55 = vadd.f32 %v1338_v32, %v3816_v46  ;;  %v987_v10 = vpop.f32.mrb[119].mxu0  ;;  %v1340_v2 = vpop.f32.mrb[119].mxu1  ;;  %v5584_v32 = vpack.c.bf16 %v4855_v40, %v4846_v58 }
 0x1e5   : > { %v5084_v34 = vadd.f32 %v987_v10, %v3812_v45  ;;  %v5087_v61 = vadd.f32 %v1340_v2, %v3818_v49 }
 0x1e6   : > { %2160 = vmatmul.mubr.bf16.gmra.mrb[224].mxu1 %v5584_v32  ;;  %2513 = vmatmul.mubr.bf16.gmra.mrb[224].mxu0 %v5585_v47 }
 0x1e7   : > { %v1480_v19 = vpack.c.bf16 %v5084_v34, %v5069_v36  ;;  %v1482_v10 = vpack.c.bf16 %v5087_v61, %v5081_v5  ;;  %2169 = vmatprep.mubr.bf16.mxu1 %v1464_v1  ;;  %2522 = vmatprep.mubr.bf16.mxu0 %v1466_v60 }
 0x1e9   : > { %v991_v58 = vpop.f32.mrb[120].mxu0  ;;  %v1344_v40 = vpop.f32.mrb[120].mxu1 }
 0x1ea   : > { %v5110_v2 = vadd.f32 %v991_v58, %v3808_v44  ;;  %v993_v57 = vpop.f32.mrb[121].mxu0  ;;  %v1346_v22 = vpop.f32.mrb[121].mxu1  ;;  %v5116_v28 = vadd.f32 %v1344_v40, %v3816_v46 }
 0x1eb   : > { %v5113_v32 = vadd.f32 %v993_v57, %v3812_v45  ;;  %v995_v47 = vpop.f32.mrb[122].mxu0  ;;  %v1348_v53 = vpop.f32.mrb[122].mxu1  ;;  %v5125_v1 = vadd.f32 %v1346_v22, %v3818_v49  ;;  %v5587_v22 = vpack.c.bf16 %v4902_v21, %v4896_v20 }
 0x1ec   : > { %v5119_v35 = vadd.f32 %v995_v47, %v3808_v44  ;;  %v5122_v50 = vadd.f32 %v1348_v53, %v3816_v46  ;;  %v997_v16 = vpop.f32.mrb[123].mxu0  ;;  %v1350_v23 = vpop.f32.mrb[123].mxu1  ;;  %v5586_v53 = vpack.c.bf16 %v4899_v54, %v4890_v52 }
 0x1ed   : > { %v5128_v60 = vadd.f32 %v997_v16, %v3812_v45  ;;  %v5131_v58 = vadd.f32 %v1350_v23, %v3818_v49 }
 0x1ee   : > { %2170 = vmatmul.mubr.bf16.gmra.mrb[228].mxu1 %v5586_v53  ;;  %2523 = vmatmul.mubr.bf16.gmra.mrb[228].mxu0 %v5587_v22 }
 0x1ef   : > { %v1484_v47 = vpack.c.bf16 %v5128_v60, %v5113_v32  ;;  %v1486_v16 = vpack.c.bf16 %v5131_v58, %v5125_v1  ;;  %2179 = vmatprep.mubr.bf16.mxu1 %v1468_v27  ;;  %2532 = vmatprep.mubr.bf16.mxu0 %v1470_v0 }
 0x1f1   : > { %v1001_v52 = vpop.f32.mrb[124].mxu0  ;;  %v1354_v54 = vpop.f32.mrb[124].mxu1 }
 0x1f2   : > { %v5154_v23 = vadd.f32 %v1001_v52, %v3808_v44  ;;  %v1003_v20 = vpop.f32.mrb[125].mxu0  ;;  %v1356_v21 = vpop.f32.mrb[125].mxu1  ;;  %v5163_v18 = vadd.f32 %v1354_v54, %v3816_v46 }
 0x1f3   : > { %v5157_v53 = vadd.f32 %v1003_v20, %v3812_v45  ;;  %v1005_v22 = vpop.f32.mrb[126].mxu0  ;;  %v1358_v57 = vpop.f32.mrb[126].mxu1  ;;  %v5172_v52 = vadd.f32 %v1356_v21, %v3818_v49 }
 0x1f4   : > { %v5166_v48 = vadd.f32 %v1005_v22, %v3808_v44  ;;  %v5169_v63 = vadd.f32 %v1358_v57, %v3816_v46  ;;  %v1007_v27 = vpop.f32.mrb[127].mxu0  ;;  %v1360_v0 = vpop.f32.mrb[127].mxu1  ;;  %v5588_v46 = vpack.c.bf16 %v4943_v41, %v4934_v29  ;;  %v5589_v57 = vpack.c.bf16 %v4946_v15, %v4940_v56 }
 0x1f5   : > { %v5175_v20 = vadd.f32 %v1007_v27, %v3812_v45  ;;  %v5178_v40 = vadd.f32 %v1360_v0, %v3818_v49  ;;  %v5590_v45 = vsub.s32 0, %v3794_v37  ;;  %v5591_v56 = vsub.s32 1, %v3794_v37 }
 0x1f6   : > { %v1487_v54 = vpack.c.bf16 %v5166_v48, %v5154_v23  ;;  %v1489_v44 = vpack.c.bf16 %v5169_v63, %v5163_v18  ;;  %2180 = vmatmul.mubr.bf16.gmra.mrb[232].mxu1 %v5588_v46  ;;  %2533 = vmatmul.mubr.bf16.gmra.mrb[232].mxu0 %v5589_v57 }
 0x1f7   : > { %v5192_v21 = vrot.slane %v1555_v3, %v5590_v45  ;;  %v1488_v49 = vpack.c.bf16 %v5175_v20, %v5157_v53  ;;  %v1490_v22 = vpack.c.bf16 %v5178_v40, %v5172_v52  ;;  %2189 = vmatprep.mubr.bf16.mxu1 %v1472_v38  ;;  %2542 = vmatprep.mubr.bf16.mxu0 %v1474_v26 }
 0x1f8   : > { %v5206_v29 = vrot.slane %v1555_v3, %v5591_v56  ;;  %v5592_v56 = vpack.c.bf16 %v4987_v33, %v4978_v6 }
 0x1f9   : > { %v1921_v41 = vpop.f32.mrb[128].mxu1  ;;  %v2274_v15 = vpop.f32.mrb[128].mxu0 }
 0x1fa   : > { %v1922_v27 = vadd.f32 %v1921_v41, %v5192_v21  ;;  %v1923_v0 = vpop.f32.mrb[129].mxu1  ;;  %v2276_v46 = vpop.f32.mrb[129].mxu0  ;;  %v5593_v41 = vpack.c.bf16 %v4990_v25, %v4984_v12 }
 0x1fb   : > { %v1924_v24 = vadd.f32 %v1923_v0, %v5206_v29  ;;  %v1925_v7 = vpop.f32.mrb[130].mxu1  ;;  %v2278_v37 = vpop.f32.mrb[130].mxu0 }
 0x1fc   : > { %v2275_v30 = vadd.f32 %v2274_v15, %v1922_v27  ;;  %v1926_v43 = vadd.f32 %v1925_v7, %v5192_v21  ;;  %v1927_v38 = vpop.f32.mrb[131].mxu1  ;;  %v2280_v26 = vpop.f32.mrb[131].mxu0 }
 0x1fd   : > { %v2277_v3 = vadd.f32 %v2276_v46, %v1924_v24  ;;  %v1928_v57 = vadd.f32 %v1927_v38, %v5206_v29 }
 0x1fe   : > { %2593 = vst [vmem:[%s5213_s23] sm:$0xff] %v2275_v30  ;;  %v2279_v45 = vadd.f32 %v2278_v37, %v1926_v43  ;;  %2190 = vmatmul.mubr.bf16.gmra.mrb[236].mxu1 %v5592_v56  ;;  %2543 = vmatmul.mubr.bf16.gmra.mrb[236].mxu0 %v5593_v41  ;;  %v5594_v37 = vpack.c.bf16 %v5031_v11, %v5022_v9 }
 0x1ff   : > { %2594 = vst [vmem:[%s5213_s23 + $0x8] sm:$0xff] %v2277_v3  ;;  %v2281_v0 = vadd.f32 %v2280_v26, %v1928_v57  ;;  %2199 = vmatprep.mubr.bf16.mxu1 %v1476_v62  ;;  %2552 = vmatprep.mubr.bf16.mxu0 %v1478_v8  ;;  %v5595_v30 = vpack.c.bf16 %v5034_v14, %v5028_v39 }
 0x200   : > { %2595 = vst [vmem:[%s5213_s23 + $0x10] sm:$0xff] %v2279_v45  ;;  %v5596_v56 = vpack.c.bf16 %v5075_v42, %v5066_v31  ;;  %v5597_v41 = vpack.c.bf16 %v5078_v55, %v5072_v4 }
 0x201   : > { %2596 = vst [vmem:[%s5213_s23 + $0x18] sm:$0xff] %v2281_v0  ;;  %v1931_v15 = vpop.f32.mrb[132].mxu1  ;;  %v2284_v6 = vpop.f32.mrb[132].mxu0 }
 0x202   : > { %v1932_v33 = vadd.f32 %v1931_v15, %v5192_v21  ;;  %v1933_v12 = vpop.f32.mrb[133].mxu1  ;;  %v2286_v25 = vpop.f32.mrb[133].mxu0 }
 0x203   : > { %v1934_v27 = vadd.f32 %v1933_v12, %v5206_v29  ;;  %v1935_v46 = vpop.f32.mrb[134].mxu1  ;;  %v2288_v17 = vpop.f32.mrb[134].mxu0 }
 0x204   : > { %v2285_v51 = vadd.f32 %v2284_v6, %v1932_v33  ;;  %v1936_v59 = vadd.f32 %v1935_v46, %v5192_v21  ;;  %v1937_v13 = vpop.f32.mrb[135].mxu1  ;;  %v2290_v62 = vpop.f32.mrb[135].mxu0  ;;  %v5599_v46 = vpack.c.bf16 %v5122_v50, %v5116_v28 }
 0x205   : > { %v2287_v8 = vadd.f32 %v2286_v25, %v1934_v27  ;;  %v1938_v24 = vadd.f32 %v1937_v13, %v5206_v29  ;;  %v5598_v27 = vpack.c.bf16 %v5119_v35, %v5110_v2 }
 0x206   : > { %2597 = vst [vmem:[%s5213_s23 + $0x20] sm:$0xff] %v2285_v51  ;;  %v2289_v7 = vadd.f32 %v2288_v17, %v1936_v59  ;;  %2200 = vmatmul.mubr.bf16.gmra.mrb[240].mxu1 %v5594_v37  ;;  %2553 = vmatmul.mubr.bf16.gmra.mrb[240].mxu0 %v5595_v30 }
 0x207   : > { %2598 = vst [vmem:[%s5213_s23 + $0x28] sm:$0xff] %v2287_v8  ;;  %v2291_v43 = vadd.f32 %v2290_v62, %v1938_v24  ;;  %2209 = vmatprep.mubr.bf16.mxu1 %v1480_v19  ;;  %2562 = vmatprep.mubr.bf16.mxu0 %v1482_v10 }
 0x208   : > { %2599 = vst [vmem:[%s5213_s23 + $0x30] sm:$0xff] %v2289_v7 }
 0x209   : > { %2600 = vst [vmem:[%s5213_s23 + $0x38] sm:$0xff] %v2291_v43  ;;  %v1941_v38 = vpop.f32.mrb[136].mxu1  ;;  %v2294_v9 = vpop.f32.mrb[136].mxu0 }
 0x20a   : > { %v1942_v11 = vadd.f32 %v1941_v38, %v5192_v21  ;;  %v1943_v39 = vpop.f32.mrb[137].mxu1  ;;  %v2296_v14 = vpop.f32.mrb[137].mxu0 }
 0x20b   : > { %v1944_v26 = vadd.f32 %v1943_v39, %v5206_v29  ;;  %v1945_v3 = vpop.f32.mrb[138].mxu1  ;;  %v2298_v36 = vpop.f32.mrb[138].mxu0 }
 0x20c   : > { %v2295_v34 = vadd.f32 %v2294_v9, %v1942_v11  ;;  %v1946_v5 = vadd.f32 %v1945_v3, %v5192_v21  ;;  %v1947_v61 = vpop.f32.mrb[139].mxu1  ;;  %v2300_v19 = vpop.f32.mrb[139].mxu0 }
 0x20d   : > { %v2297_v10 = vadd.f32 %v2296_v14, %v1944_v26  ;;  %v1948_v57 = vadd.f32 %v1947_v61, %v5206_v29 }
 0x20e   : > { %2601 = vst [vmem:[%s5213_s23 + $0x40] sm:$0xff] %v2295_v34  ;;  %v2299_v45 = vadd.f32 %v2298_v36, %v1946_v5  ;;  %2210 = vmatmul.mubr.bf16.gmra.mrb[244].mxu1 %v5596_v56  ;;  %2563 = vmatmul.mubr.bf16.gmra.mrb[244].mxu0 %v5597_v41 }
 0x20f   : > { %2602 = vst [vmem:[%s5213_s23 + $0x48] sm:$0xff] %v2297_v10  ;;  %v2301_v0 = vadd.f32 %v2300_v19, %v1948_v57  ;;  %2219 = vmatprep.mubr.bf16.mxu1 %v1484_v47  ;;  %2572 = vmatprep.mubr.bf16.mxu0 %v1486_v16 }
 0x210   : > { %2603 = vst [vmem:[%s5213_s23 + $0x50] sm:$0xff] %v2299_v45 }
 0x211   : > { %2604 = vst [vmem:[%s5213_s23 + $0x58] sm:$0xff] %v2301_v0  ;;  %v1951_v15 = vpop.f32.mrb[140].mxu1  ;;  %v2304_v31 = vpop.f32.mrb[140].mxu0 }
 0x212   : > { %v1952_v42 = vadd.f32 %v1951_v15, %v5192_v21  ;;  %v1953_v4 = vpop.f32.mrb[141].mxu1  ;;  %v2306_v55 = vpop.f32.mrb[141].mxu0 }
 0x213   : > { %v1954_v6 = vadd.f32 %v1953_v4, %v5206_v29  ;;  %v1955_v33 = vpop.f32.mrb[142].mxu1  ;;  %v2308_v32 = vpop.f32.mrb[142].mxu0 }
 0x214   : > { %v2305_v60 = vadd.f32 %v2304_v31, %v1952_v42  ;;  %v1956_v1 = vadd.f32 %v1955_v33, %v5192_v21  ;;  %v1957_v58 = vpop.f32.mrb[143].mxu1  ;;  %v2310_v47 = vpop.f32.mrb[143].mxu0 }
 0x215   : > { %v2307_v16 = vadd.f32 %v2306_v55, %v1954_v6  ;;  %v1958_v12 = vadd.f32 %v1957_v58, %v5206_v29 }
 0x216   : > { %2605 = vst [vmem:[%s5213_s23 + $0x60] sm:$0xff] %v2305_v60  ;;  %v2309_v25 = vadd.f32 %v2308_v32, %v1956_v1  ;;  %2220 = vmatmul.mubr.bf16.gmra.mrb[248].mxu1 %v5598_v27  ;;  %2573 = vmatmul.mubr.bf16.gmra.mrb[248].mxu0 %v5599_v46 }
 0x217   : > { %2606 = vst [vmem:[%s5213_s23 + $0x68] sm:$0xff] %v2307_v16  ;;  %v2311_v17 = vadd.f32 %v2310_v47, %v1958_v12  ;;  %2229 = vmatprep.mubr.bf16.mxu1 %v1488_v49  ;;  %2582 = vmatprep.mubr.bf16.mxu0 %v1490_v22 }
 0x218   : > { %2607 = vst [vmem:[%s5213_s23 + $0x70] sm:$0xff] %v2309_v25 }
 0x219   : > { %2608 = vst [vmem:[%s5213_s23 + $0x78] sm:$0xff] %v2311_v17  ;;  %v1961_v51 = vpop.f32.mrb[144].mxu1  ;;  %v2314_v2 = vpop.f32.mrb[144].mxu0 }
 0x21a   : > { %v1962_v35 = vadd.f32 %v1961_v51, %v5192_v21  ;;  %v1963_v28 = vpop.f32.mrb[145].mxu1  ;;  %v2316_v50 = vpop.f32.mrb[145].mxu0 }
 0x21b   : > { %v1964_v59 = vadd.f32 %v1963_v28, %v5206_v29  ;;  %v1965_v53 = vpop.f32.mrb[146].mxu1  ;;  %v2318_v20 = vpop.f32.mrb[146].mxu0 }
 0x21c   : > { %v2315_v49 = vadd.f32 %v2314_v2, %v1962_v35  ;;  %v1966_v40 = vadd.f32 %v1965_v53, %v5192_v21  ;;  %v1967_v52 = vpop.f32.mrb[147].mxu1  ;;  %v2320_v22 = vpop.f32.mrb[147].mxu0 }
 0x21d   : > { %v2317_v13 = vadd.f32 %v2316_v50, %v1964_v59  ;;  %v1968_v62 = vadd.f32 %v1967_v52, %v5206_v29 }
 0x21e   : > { %2609 = vst [vmem:[%s5213_s23 + $0x80] sm:$0xff] %v2315_v49  ;;  %v2319_v8 = vadd.f32 %v2318_v20, %v1966_v40  ;;  %2230 = vmatmul.mubr.bf16.gmra.mrb[252].mxu1 %v1487_v54  ;;  %2583 = vmatmul.mubr.bf16.gmra.mrb[252].mxu0 %v1489_v44 }
 0x21f   : > { %2610 = vst [vmem:[%s5213_s23 + $0x88] sm:$0xff] %v2317_v13  ;;  %v2321_v24 = vadd.f32 %v2320_v22, %v1968_v62 }
 0x220   : > { %2611 = vst [vmem:[%s5213_s23 + $0x90] sm:$0xff] %v2319_v8 }
 0x221   : > { %2612 = vst [vmem:[%s5213_s23 + $0x98] sm:$0xff] %v2321_v24  ;;  %v1971_v7 = vpop.f32.mrb[148].mxu1  ;;  %v2324_v37 = vpop.f32.mrb[148].mxu0 }
 0x222   : > { %v1972_v30 = vadd.f32 %v1971_v7, %v5192_v21  ;;  %v1973_v43 = vpop.f32.mrb[149].mxu1  ;;  %v2326_v38 = vpop.f32.mrb[149].mxu0 }
 0x223   : > { %v1974_v23 = vadd.f32 %v1973_v43, %v5206_v29  ;;  %v1975_v48 = vpop.f32.mrb[150].mxu1  ;;  %v2328_v54 = vpop.f32.mrb[150].mxu0 }
 0x224   : > { %v2325_v18 = vadd.f32 %v2324_v37, %v1972_v30  ;;  %v1976_v63 = vadd.f32 %v1975_v48, %v5192_v21  ;;  %v1977_v44 = vpop.f32.mrb[151].mxu1  ;;  %v2330_v9 = vpop.f32.mrb[151].mxu0 }
 0x225   : > { %v2327_v11 = vadd.f32 %v2326_v38, %v1974_v23  ;;  %v1978_v39 = vadd.f32 %v1977_v44, %v5206_v29 }
 0x226   : > { %2613 = vst [vmem:[%s5213_s23 + $0xa0] sm:$0xff] %v2325_v18  ;;  %v2329_v14 = vadd.f32 %v2328_v54, %v1976_v63 }
 0x227   : > { %2614 = vst [vmem:[%s5213_s23 + $0xa8] sm:$0xff] %v2327_v11  ;;  %v2331_v26 = vadd.f32 %v2330_v9, %v1978_v39 }
 0x228   : > { %2615 = vst [vmem:[%s5213_s23 + $0xb0] sm:$0xff] %v2329_v14 }
 0x229   : > { %2616 = vst [vmem:[%s5213_s23 + $0xb8] sm:$0xff] %v2331_v26  ;;  %v1981_v3 = vpop.f32.mrb[152].mxu1  ;;  %v2334_v36 = vpop.f32.mrb[152].mxu0 }
 0x22a   : > { %v1982_v34 = vadd.f32 %v1981_v3, %v5192_v21  ;;  %v1983_v5 = vpop.f32.mrb[153].mxu1  ;;  %v2336_v61 = vpop.f32.mrb[153].mxu0 }
 0x22b   : > { %v1984_v19 = vadd.f32 %v1983_v5, %v5206_v29  ;;  %v1985_v10 = vpop.f32.mrb[154].mxu1  ;;  %v2338_v57 = vpop.f32.mrb[154].mxu0 }
 0x22c   : > { %v2335_v45 = vadd.f32 %v2334_v36, %v1982_v34  ;;  %v1986_v56 = vadd.f32 %v1985_v10, %v5192_v21  ;;  %v1987_v41 = vpop.f32.mrb[155].mxu1  ;;  %v2340_v0 = vpop.f32.mrb[155].mxu0 }
 0x22d   : > { %v2337_v15 = vadd.f32 %v2336_v61, %v1984_v19  ;;  %v1988_v31 = vadd.f32 %v1987_v41, %v5206_v29 }
 0x22e   : > { %2617 = vst [vmem:[%s5213_s23 + $0xc0] sm:$0xff] %v2335_v45  ;;  %v2339_v42 = vadd.f32 %v2338_v57, %v1986_v56 }
 0x22f   : > { %2618 = vst [vmem:[%s5213_s23 + $0xc8] sm:$0xff] %v2337_v15  ;;  %v2341_v4 = vadd.f32 %v2340_v0, %v1988_v31 }
 0x230   : > { %2619 = vst [vmem:[%s5213_s23 + $0xd0] sm:$0xff] %v2339_v42 }
 0x231   : > { %2620 = vst [vmem:[%s5213_s23 + $0xd8] sm:$0xff] %v2341_v4  ;;  %v1991_v55 = vpop.f32.mrb[156].mxu1  ;;  %v2344_v6 = vpop.f32.mrb[156].mxu0 }
 0x232   : > { %v1992_v33 = vadd.f32 %v1991_v55, %v5192_v21  ;;  %v1993_v32 = vpop.f32.mrb[157].mxu1  ;;  %v2346_v60 = vpop.f32.mrb[157].mxu0 }
 0x233   : > { %v1994_v1 = vadd.f32 %v1993_v32, %v5206_v29  ;;  %v1995_v58 = vpop.f32.mrb[158].mxu1  ;;  %v2348_v47 = vpop.f32.mrb[158].mxu0 }
 0x234   : > { %v2345_v16 = vadd.f32 %v2344_v6, %v1992_v33  ;;  %v1996_v12 = vadd.f32 %v1995_v58, %v5192_v21  ;;  %v1997_v25 = vpop.f32.mrb[159].mxu1  ;;  %v2350_v27 = vpop.f32.mrb[159].mxu0 }
 0x235   : > { %v2347_v46 = vadd.f32 %v2346_v60, %v1994_v1  ;;  %v1998_v17 = vadd.f32 %v1997_v25, %v5206_v29 }
 0x236   : > { %2621 = vst [vmem:[%s5213_s23 + $0xe0] sm:$0xff] %v2345_v16  ;;  %v2349_v51 = vadd.f32 %v2348_v47, %v1996_v12 }
 0x237   : > { %2622 = vst [vmem:[%s5213_s23 + $0xe8] sm:$0xff] %v2347_v46  ;;  %v2351_v2 = vadd.f32 %v2350_v27, %v1998_v17 }
 0x238   : > { %2623 = vst [vmem:[%s5213_s23 + $0xf0] sm:$0xff] %v2349_v51 }
 0x239   : > { %2624 = vst [vmem:[%s5213_s23 + $0xf8] sm:$0xff] %v2351_v2  ;;  %v2001_v35 = vpop.f32.mrb[160].mxu1  ;;  %v2354_v28 = vpop.f32.mrb[160].mxu0 }
 0x23a   : > { %v2002_v50 = vadd.f32 %v2001_v35, %v5192_v21  ;;  %v2003_v59 = vpop.f32.mrb[161].mxu1  ;;  %v2356_v53 = vpop.f32.mrb[161].mxu0 }
 0x23b   : > { %v2004_v20 = vadd.f32 %v2003_v59, %v5206_v29  ;;  %v2005_v49 = vpop.f32.mrb[162].mxu1  ;;  %v2358_v40 = vpop.f32.mrb[162].mxu0 }
 0x23c   : > { %v2355_v52 = vadd.f32 %v2354_v28, %v2002_v50  ;;  %v2006_v22 = vadd.f32 %v2005_v49, %v5192_v21  ;;  %v2007_v13 = vpop.f32.mrb[163].mxu1  ;;  %v2360_v62 = vpop.f32.mrb[163].mxu0 }
 0x23d   : > { %v2357_v8 = vadd.f32 %v2356_v53, %v2004_v20  ;;  %v2008_v24 = vadd.f32 %v2007_v13, %v5206_v29 }
 0x23e   : > { %2625 = vst [vmem:[%s5213_s23 + $0x100] sm:$0xff] %v2355_v52  ;;  %v2359_v7 = vadd.f32 %v2358_v40, %v2006_v22 }
 0x23f   : > { %2626 = vst [vmem:[%s5213_s23 + $0x108] sm:$0xff] %v2357_v8  ;;  %v2361_v37 = vadd.f32 %v2360_v62, %v2008_v24 }
 0x240   : > { %2627 = vst [vmem:[%s5213_s23 + $0x110] sm:$0xff] %v2359_v7 }
 0x241   : > { %2628 = vst [vmem:[%s5213_s23 + $0x118] sm:$0xff] %v2361_v37  ;;  %v2011_v30 = vpop.f32.mrb[164].mxu1  ;;  %v2364_v43 = vpop.f32.mrb[164].mxu0 }
 0x242   : > { %v2012_v38 = vadd.f32 %v2011_v30, %v5192_v21  ;;  %v2013_v23 = vpop.f32.mrb[165].mxu1  ;;  %v2366_v48 = vpop.f32.mrb[165].mxu0 }
 0x243   : > { %v2014_v54 = vadd.f32 %v2013_v23, %v5206_v29  ;;  %v2015_v18 = vpop.f32.mrb[166].mxu1  ;;  %v2368_v63 = vpop.f32.mrb[166].mxu0 }
 0x244   : > { %v2365_v44 = vadd.f32 %v2364_v43, %v2012_v38  ;;  %v2016_v9 = vadd.f32 %v2015_v18, %v5192_v21  ;;  %v2017_v11 = vpop.f32.mrb[167].mxu1  ;;  %v2370_v39 = vpop.f32.mrb[167].mxu0 }
 0x245   : > { %v2367_v14 = vadd.f32 %v2366_v48, %v2014_v54  ;;  %v2018_v26 = vadd.f32 %v2017_v11, %v5206_v29 }
 0x246   : > { %2629 = vst [vmem:[%s5213_s23 + $0x120] sm:$0xff] %v2365_v44  ;;  %v2369_v3 = vadd.f32 %v2368_v63, %v2016_v9 }
 0x247   : > { %2630 = vst [vmem:[%s5213_s23 + $0x128] sm:$0xff] %v2367_v14  ;;  %v2371_v36 = vadd.f32 %v2370_v39, %v2018_v26 }
 0x248   : > { %2631 = vst [vmem:[%s5213_s23 + $0x130] sm:$0xff] %v2369_v3 }
 0x249   : > { %2632 = vst [vmem:[%s5213_s23 + $0x138] sm:$0xff] %v2371_v36  ;;  %v2021_v34 = vpop.f32.mrb[168].mxu1  ;;  %v2374_v5 = vpop.f32.mrb[168].mxu0 }
 0x24a   : > { %v2022_v61 = vadd.f32 %v2021_v34, %v5192_v21  ;;  %v2023_v19 = vpop.f32.mrb[169].mxu1  ;;  %v2376_v10 = vpop.f32.mrb[169].mxu0 }
 0x24b   : > { %v2024_v57 = vadd.f32 %v2023_v19, %v5206_v29  ;;  %v2025_v45 = vpop.f32.mrb[170].mxu1  ;;  %v2378_v56 = vpop.f32.mrb[170].mxu0 }
 0x24c   : > { %v2375_v41 = vadd.f32 %v2374_v5, %v2022_v61  ;;  %v2026_v0 = vadd.f32 %v2025_v45, %v5192_v21  ;;  %v2027_v15 = vpop.f32.mrb[171].mxu1  ;;  %v2380_v31 = vpop.f32.mrb[171].mxu0 }
 0x24d   : > { %v2377_v42 = vadd.f32 %v2376_v10, %v2024_v57  ;;  %v2028_v4 = vadd.f32 %v2027_v15, %v5206_v29 }
 0x24e   : > { %2633 = vst [vmem:[%s5213_s23 + $0x140] sm:$0xff] %v2375_v41  ;;  %v2379_v55 = vadd.f32 %v2378_v56, %v2026_v0 }
 0x24f   : > { %2634 = vst [vmem:[%s5213_s23 + $0x148] sm:$0xff] %v2377_v42  ;;  %v2381_v6 = vadd.f32 %v2380_v31, %v2028_v4 }
 0x250   : > { %2635 = vst [vmem:[%s5213_s23 + $0x150] sm:$0xff] %v2379_v55 }
 0x251   : > { %2636 = vst [vmem:[%s5213_s23 + $0x158] sm:$0xff] %v2381_v6  ;;  %v2031_v33 = vpop.f32.mrb[172].mxu1  ;;  %v2384_v32 = vpop.f32.mrb[172].mxu0 }
 0x252   : > { %v2032_v60 = vadd.f32 %v2031_v33, %v5192_v21  ;;  %v2033_v1 = vpop.f32.mrb[173].mxu1  ;;  %v2386_v58 = vpop.f32.mrb[173].mxu0 }
 0x253   : > { %v2034_v47 = vadd.f32 %v2033_v1, %v5206_v29  ;;  %v2035_v16 = vpop.f32.mrb[174].mxu1  ;;  %v2388_v12 = vpop.f32.mrb[174].mxu0 }
 0x254   : > { %v2385_v25 = vadd.f32 %v2384_v32, %v2032_v60  ;;  %v2036_v27 = vadd.f32 %v2035_v16, %v5192_v21  ;;  %v2037_v46 = vpop.f32.mrb[175].mxu1  ;;  %v2390_v17 = vpop.f32.mrb[175].mxu0 }
 0x255   : > { %v2387_v51 = vadd.f32 %v2386_v58, %v2034_v47  ;;  %v2038_v2 = vadd.f32 %v2037_v46, %v5206_v29 }
 0x256   : > { %2637 = vst [vmem:[%s5213_s23 + $0x160] sm:$0xff] %v2385_v25  ;;  %v2389_v35 = vadd.f32 %v2388_v12, %v2036_v27 }
 0x257   : > { %2638 = vst [vmem:[%s5213_s23 + $0x168] sm:$0xff] %v2387_v51  ;;  %v2391_v28 = vadd.f32 %v2390_v17, %v2038_v2 }
 0x258   : > { %2639 = vst [vmem:[%s5213_s23 + $0x170] sm:$0xff] %v2389_v35 }
 0x259   : > { %2640 = vst [vmem:[%s5213_s23 + $0x178] sm:$0xff] %v2391_v28  ;;  %v2041_v50 = vpop.f32.mrb[176].mxu1  ;;  %v2394_v59 = vpop.f32.mrb[176].mxu0 }
 0x25a   : > { %v2042_v53 = vadd.f32 %v2041_v50, %v5192_v21  ;;  %v2043_v20 = vpop.f32.mrb[177].mxu1  ;;  %v2396_v49 = vpop.f32.mrb[177].mxu0 }
 0x25b   : > { %v2044_v40 = vadd.f32 %v2043_v20, %v5206_v29  ;;  %v2045_v52 = vpop.f32.mrb[178].mxu1  ;;  %v2398_v22 = vpop.f32.mrb[178].mxu0 }
 0x25c   : > { %v2395_v13 = vadd.f32 %v2394_v59, %v2042_v53  ;;  %v2046_v62 = vadd.f32 %v2045_v52, %v5192_v21  ;;  %v2047_v8 = vpop.f32.mrb[179].mxu1  ;;  %v2400_v24 = vpop.f32.mrb[179].mxu0 }
 0x25d   : > { %v2397_v7 = vadd.f32 %v2396_v49, %v2044_v40  ;;  %v2048_v37 = vadd.f32 %v2047_v8, %v5206_v29 }
 0x25e   : > { %2641 = vst [vmem:[%s5213_s23 + $0x180] sm:$0xff] %v2395_v13  ;;  %v2399_v30 = vadd.f32 %v2398_v22, %v2046_v62 }
 0x25f   : > { %2642 = vst [vmem:[%s5213_s23 + $0x188] sm:$0xff] %v2397_v7  ;;  %v2401_v43 = vadd.f32 %v2400_v24, %v2048_v37 }
 0x260   : > { %2643 = vst [vmem:[%s5213_s23 + $0x190] sm:$0xff] %v2399_v30 }
 0x261   : > { %2644 = vst [vmem:[%s5213_s23 + $0x198] sm:$0xff] %v2401_v43  ;;  %v2051_v38 = vpop.f32.mrb[180].mxu1  ;;  %v2404_v23 = vpop.f32.mrb[180].mxu0 }
 0x262   : > { %v2052_v48 = vadd.f32 %v2051_v38, %v5192_v21  ;;  %v2053_v54 = vpop.f32.mrb[181].mxu1  ;;  %v2406_v18 = vpop.f32.mrb[181].mxu0 }
 0x263   : > { %v2054_v63 = vadd.f32 %v2053_v54, %v5206_v29  ;;  %v2055_v44 = vpop.f32.mrb[182].mxu1  ;;  %v2408_v9 = vpop.f32.mrb[182].mxu0 }
 0x264   : > { %v2405_v11 = vadd.f32 %v2404_v23, %v2052_v48  ;;  %v2056_v39 = vadd.f32 %v2055_v44, %v5192_v21  ;;  %v2057_v14 = vpop.f32.mrb[183].mxu1  ;;  %v2410_v26 = vpop.f32.mrb[183].mxu0 }
 0x265   : > { %v2407_v3 = vadd.f32 %v2406_v18, %v2054_v63  ;;  %v2058_v36 = vadd.f32 %v2057_v14, %v5206_v29 }
 0x266   : > { %2645 = vst [vmem:[%s5213_s23 + $0x1a0] sm:$0xff] %v2405_v11  ;;  %v2409_v34 = vadd.f32 %v2408_v9, %v2056_v39 }
 0x267   : > { %2646 = vst [vmem:[%s5213_s23 + $0x1a8] sm:$0xff] %v2407_v3  ;;  %v2411_v5 = vadd.f32 %v2410_v26, %v2058_v36 }
 0x268   : > { %2647 = vst [vmem:[%s5213_s23 + $0x1b0] sm:$0xff] %v2409_v34 }
 0x269   : > { %2648 = vst [vmem:[%s5213_s23 + $0x1b8] sm:$0xff] %v2411_v5  ;;  %v2061_v61 = vpop.f32.mrb[184].mxu1  ;;  %v2414_v19 = vpop.f32.mrb[184].mxu0 }
 0x26a   : > { %v2062_v10 = vadd.f32 %v2061_v61, %v5192_v21  ;;  %v2063_v57 = vpop.f32.mrb[185].mxu1  ;;  %v2416_v45 = vpop.f32.mrb[185].mxu0 }
 0x26b   : > { %v2064_v56 = vadd.f32 %v2063_v57, %v5206_v29  ;;  %v2065_v41 = vpop.f32.mrb[186].mxu1  ;;  %v2418_v0 = vpop.f32.mrb[186].mxu0 }
 0x26c   : > { %v2415_v15 = vadd.f32 %v2414_v19, %v2062_v10  ;;  %v2066_v31 = vadd.f32 %v2065_v41, %v5192_v21  ;;  %v2067_v42 = vpop.f32.mrb[187].mxu1  ;;  %v2420_v4 = vpop.f32.mrb[187].mxu0 }
 0x26d   : > { %v2417_v55 = vadd.f32 %v2416_v45, %v2064_v56  ;;  %v2068_v6 = vadd.f32 %v2067_v42, %v5206_v29 }
 0x26e   : > { %2649 = vst [vmem:[%s5213_s23 + $0x1c0] sm:$0xff] %v2415_v15  ;;  %v2419_v33 = vadd.f32 %v2418_v0, %v2066_v31 }
 0x26f   : > { %2650 = vst [vmem:[%s5213_s23 + $0x1c8] sm:$0xff] %v2417_v55  ;;  %v2421_v32 = vadd.f32 %v2420_v4, %v2068_v6 }
 0x270   : > { %2651 = vst [vmem:[%s5213_s23 + $0x1d0] sm:$0xff] %v2419_v33 }
 0x271   : > { %2652 = vst [vmem:[%s5213_s23 + $0x1d8] sm:$0xff] %v2421_v32  ;;  %v2071_v60 = vpop.f32.mrb[188].mxu1  ;;  %v2424_v1 = vpop.f32.mrb[188].mxu0 }
 0x272   : > { %v2072_v58 = vadd.f32 %v2071_v60, %v5192_v21  ;;  %v2073_v47 = vpop.f32.mrb[189].mxu1  ;;  %v2426_v16 = vpop.f32.mrb[189].mxu0 }
 0x273   : > { %v2074_v12 = vadd.f32 %v2073_v47, %v5206_v29  ;;  %v2075_v25 = vpop.f32.mrb[190].mxu1  ;;  %v2428_v27 = vpop.f32.mrb[190].mxu0 }
 0x274   : > { %v2425_v46 = vadd.f32 %v2424_v1, %v2072_v58  ;;  %v2076_v17 = vadd.f32 %v2075_v25, %v5192_v21  ;;  %v2077_v51 = vpop.f32.mrb[191].mxu1  ;;  %v2430_v2 = vpop.f32.mrb[191].mxu0 }
 0x275   : > { %v2427_v35 = vadd.f32 %v2426_v16, %v2074_v12  ;;  %v2078_v28 = vadd.f32 %v2077_v51, %v5206_v29 }
 0x276   : > { %2653 = vst [vmem:[%s5213_s23 + $0x1e0] sm:$0xff] %v2425_v46  ;;  %v2429_v50 = vadd.f32 %v2428_v27, %v2076_v17 }
 0x277   : > { %2654 = vst [vmem:[%s5213_s23 + $0x1e8] sm:$0xff] %v2427_v35  ;;  %v2431_v59 = vadd.f32 %v2430_v2, %v2078_v28 }
 0x278   : > { %2655 = vst [vmem:[%s5213_s23 + $0x1f0] sm:$0xff] %v2429_v50 }
 0x279   : > { %2656 = vst [vmem:[%s5213_s23 + $0x1f8] sm:$0xff] %v2431_v59  ;;  %v2081_v53 = vpop.f32.mrb[192].mxu1  ;;  %v2434_v20 = vpop.f32.mrb[192].mxu0 }
 0x27a   : > { %v2082_v49 = vadd.f32 %v2081_v53, %v5192_v21  ;;  %v2083_v40 = vpop.f32.mrb[193].mxu1  ;;  %v2436_v52 = vpop.f32.mrb[193].mxu0 }
 0x27b   : > { %v2084_v22 = vadd.f32 %v2083_v40, %v5206_v29  ;;  %v2085_v13 = vpop.f32.mrb[194].mxu1  ;;  %v2438_v62 = vpop.f32.mrb[194].mxu0 }
 0x27c   : > { %v2435_v8 = vadd.f32 %v2434_v20, %v2082_v49  ;;  %v2086_v24 = vadd.f32 %v2085_v13, %v5192_v21  ;;  %v2087_v7 = vpop.f32.mrb[195].mxu1  ;;  %v2440_v37 = vpop.f32.mrb[195].mxu0 }
 0x27d   : > { %v2437_v30 = vadd.f32 %v2436_v52, %v2084_v22  ;;  %v2088_v43 = vadd.f32 %v2087_v7, %v5206_v29 }
 0x27e   : > { %2657 = vst [vmem:[%s5213_s23 + $0x200] sm:$0xff] %v2435_v8  ;;  %v2439_v38 = vadd.f32 %v2438_v62, %v2086_v24 }
 0x27f   : > { %2658 = vst [vmem:[%s5213_s23 + $0x208] sm:$0xff] %v2437_v30  ;;  %v2441_v23 = vadd.f32 %v2440_v37, %v2088_v43 }
 0x280   : > { %2659 = vst [vmem:[%s5213_s23 + $0x210] sm:$0xff] %v2439_v38 }
 0x281   : > { %2660 = vst [vmem:[%s5213_s23 + $0x218] sm:$0xff] %v2441_v23  ;;  %v2091_v48 = vpop.f32.mrb[196].mxu1  ;;  %v2444_v54 = vpop.f32.mrb[196].mxu0 }
 0x282   : > { %v2092_v18 = vadd.f32 %v2091_v48, %v5192_v21  ;;  %v2093_v63 = vpop.f32.mrb[197].mxu1  ;;  %v2446_v44 = vpop.f32.mrb[197].mxu0 }
 0x283   : > { %v2094_v9 = vadd.f32 %v2093_v63, %v5206_v29  ;;  %v2095_v11 = vpop.f32.mrb[198].mxu1  ;;  %v2448_v39 = vpop.f32.mrb[198].mxu0 }
 0x284   : > { %v2445_v14 = vadd.f32 %v2444_v54, %v2092_v18  ;;  %v2096_v26 = vadd.f32 %v2095_v11, %v5192_v21  ;;  %v2097_v3 = vpop.f32.mrb[199].mxu1  ;;  %v2450_v36 = vpop.f32.mrb[199].mxu0 }
 0x285   : > { %v2447_v34 = vadd.f32 %v2446_v44, %v2094_v9  ;;  %v2098_v5 = vadd.f32 %v2097_v3, %v5206_v29 }
 0x286   : > { %2661 = vst [vmem:[%s5213_s23 + $0x220] sm:$0xff] %v2445_v14  ;;  %v2449_v61 = vadd.f32 %v2448_v39, %v2096_v26 }
 0x287   : > { %2662 = vst [vmem:[%s5213_s23 + $0x228] sm:$0xff] %v2447_v34  ;;  %v2451_v19 = vadd.f32 %v2450_v36, %v2098_v5 }
 0x288   : > { %2663 = vst [vmem:[%s5213_s23 + $0x230] sm:$0xff] %v2449_v61 }
 0x289   : > { %2664 = vst [vmem:[%s5213_s23 + $0x238] sm:$0xff] %v2451_v19  ;;  %v2101_v10 = vpop.f32.mrb[200].mxu1  ;;  %v2454_v57 = vpop.f32.mrb[200].mxu0 }
 0x28a   : > { %v2102_v45 = vadd.f32 %v2101_v10, %v5192_v21  ;;  %v2103_v56 = vpop.f32.mrb[201].mxu1  ;;  %v2456_v41 = vpop.f32.mrb[201].mxu0 }
 0x28b   : > { %v2104_v0 = vadd.f32 %v2103_v56, %v5206_v29  ;;  %v2105_v15 = vpop.f32.mrb[202].mxu1  ;;  %v2458_v31 = vpop.f32.mrb[202].mxu0 }
 0x28c   : > { %v2455_v42 = vadd.f32 %v2454_v57, %v2102_v45  ;;  %v2106_v4 = vadd.f32 %v2105_v15, %v5192_v21  ;;  %v2107_v55 = vpop.f32.mrb[203].mxu1  ;;  %v2460_v6 = vpop.f32.mrb[203].mxu0 }
 0x28d   : > { %v2457_v33 = vadd.f32 %v2456_v41, %v2104_v0  ;;  %v2108_v32 = vadd.f32 %v2107_v55, %v5206_v29 }
 0x28e   : > { %2665 = vst [vmem:[%s5213_s23 + $0x240] sm:$0xff] %v2455_v42  ;;  %v2459_v60 = vadd.f32 %v2458_v31, %v2106_v4 }
 0x28f   : > { %2666 = vst [vmem:[%s5213_s23 + $0x248] sm:$0xff] %v2457_v33  ;;  %v2461_v1 = vadd.f32 %v2460_v6, %v2108_v32 }
 0x290   : > { %2667 = vst [vmem:[%s5213_s23 + $0x250] sm:$0xff] %v2459_v60 }
 0x291   : > { %2668 = vst [vmem:[%s5213_s23 + $0x258] sm:$0xff] %v2461_v1  ;;  %v2111_v58 = vpop.f32.mrb[204].mxu1  ;;  %v2464_v47 = vpop.f32.mrb[204].mxu0 }
 0x292   : > { %v2112_v16 = vadd.f32 %v2111_v58, %v5192_v21  ;;  %v2113_v12 = vpop.f32.mrb[205].mxu1  ;;  %v2466_v25 = vpop.f32.mrb[205].mxu0 }
 0x293   : > { %v2114_v27 = vadd.f32 %v2113_v12, %v5206_v29  ;;  %v2115_v46 = vpop.f32.mrb[206].mxu1  ;;  %v2468_v17 = vpop.f32.mrb[206].mxu0 }
 0x294   : > { %v2465_v51 = vadd.f32 %v2464_v47, %v2112_v16  ;;  %v2116_v2 = vadd.f32 %v2115_v46, %v5192_v21  ;;  %v2117_v35 = vpop.f32.mrb[207].mxu1  ;;  %v2470_v28 = vpop.f32.mrb[207].mxu0 }
 0x295   : > { %v2467_v50 = vadd.f32 %v2466_v25, %v2114_v27  ;;  %v2118_v59 = vadd.f32 %v2117_v35, %v5206_v29 }
 0x296   : > { %2669 = vst [vmem:[%s5213_s23 + $0x260] sm:$0xff] %v2465_v51  ;;  %v2469_v53 = vadd.f32 %v2468_v17, %v2116_v2 }
 0x297   : > { %2670 = vst [vmem:[%s5213_s23 + $0x268] sm:$0xff] %v2467_v50  ;;  %v2471_v20 = vadd.f32 %v2470_v28, %v2118_v59 }
 0x298   : > { %2671 = vst [vmem:[%s5213_s23 + $0x270] sm:$0xff] %v2469_v53 }
 0x299   : > { %2672 = vst [vmem:[%s5213_s23 + $0x278] sm:$0xff] %v2471_v20  ;;  %v2121_v49 = vpop.f32.mrb[208].mxu1  ;;  %v2474_v40 = vpop.f32.mrb[208].mxu0 }
 0x29a   : > { %v2122_v52 = vadd.f32 %v2121_v49, %v5192_v21  ;;  %v2123_v22 = vpop.f32.mrb[209].mxu1  ;;  %v2476_v13 = vpop.f32.mrb[209].mxu0 }
 0x29b   : > { %v2124_v62 = vadd.f32 %v2123_v22, %v5206_v29  ;;  %v2125_v8 = vpop.f32.mrb[210].mxu1  ;;  %v2478_v24 = vpop.f32.mrb[210].mxu0 }
 0x29c   : > { %v2475_v7 = vadd.f32 %v2474_v40, %v2122_v52  ;;  %v2126_v37 = vadd.f32 %v2125_v8, %v5192_v21  ;;  %v2127_v30 = vpop.f32.mrb[211].mxu1  ;;  %v2480_v43 = vpop.f32.mrb[211].mxu0 }
 0x29d   : > { %v2477_v38 = vadd.f32 %v2476_v13, %v2124_v62  ;;  %v2128_v23 = vadd.f32 %v2127_v30, %v5206_v29 }
 0x29e   : > { %2673 = vst [vmem:[%s5213_s23 + $0x280] sm:$0xff] %v2475_v7  ;;  %v2479_v48 = vadd.f32 %v2478_v24, %v2126_v37 }
 0x29f   : > { %2674 = vst [vmem:[%s5213_s23 + $0x288] sm:$0xff] %v2477_v38  ;;  %v2481_v54 = vadd.f32 %v2480_v43, %v2128_v23 }
 0x2a0   : > { %2675 = vst [vmem:[%s5213_s23 + $0x290] sm:$0xff] %v2479_v48 }
 0x2a1   : > { %2676 = vst [vmem:[%s5213_s23 + $0x298] sm:$0xff] %v2481_v54  ;;  %v2131_v18 = vpop.f32.mrb[212].mxu1  ;;  %v2484_v63 = vpop.f32.mrb[212].mxu0 }
 0x2a2   : > { %v2132_v44 = vadd.f32 %v2131_v18, %v5192_v21  ;;  %v2133_v9 = vpop.f32.mrb[213].mxu1  ;;  %v2486_v11 = vpop.f32.mrb[213].mxu0 }
 0x2a3   : > { %v2134_v39 = vadd.f32 %v2133_v9, %v5206_v29  ;;  %v2135_v14 = vpop.f32.mrb[214].mxu1  ;;  %v2488_v26 = vpop.f32.mrb[214].mxu0 }
 0x2a4   : > { %v2485_v3 = vadd.f32 %v2484_v63, %v2132_v44  ;;  %v2136_v36 = vadd.f32 %v2135_v14, %v5192_v21  ;;  %v2137_v34 = vpop.f32.mrb[215].mxu1  ;;  %v2490_v5 = vpop.f32.mrb[215].mxu0 }
 0x2a5   : > { %v2487_v61 = vadd.f32 %v2486_v11, %v2134_v39  ;;  %v2138_v19 = vadd.f32 %v2137_v34, %v5206_v29 }
 0x2a6   : > { %2677 = vst [vmem:[%s5213_s23 + $0x2a0] sm:$0xff] %v2485_v3  ;;  %v2489_v10 = vadd.f32 %v2488_v26, %v2136_v36 }
 0x2a7   : > { %2678 = vst [vmem:[%s5213_s23 + $0x2a8] sm:$0xff] %v2487_v61  ;;  %v2491_v57 = vadd.f32 %v2490_v5, %v2138_v19 }
 0x2a8   : > { %2679 = vst [vmem:[%s5213_s23 + $0x2b0] sm:$0xff] %v2489_v10 }
 0x2a9   : > { %2680 = vst [vmem:[%s5213_s23 + $0x2b8] sm:$0xff] %v2491_v57  ;;  %v2141_v45 = vpop.f32.mrb[216].mxu1  ;;  %v2494_v56 = vpop.f32.mrb[216].mxu0 }
 0x2aa   : > { %v2142_v41 = vadd.f32 %v2141_v45, %v5192_v21  ;;  %v2143_v0 = vpop.f32.mrb[217].mxu1  ;;  %v2496_v15 = vpop.f32.mrb[217].mxu0 }
 0x2ab   : > { %v2144_v31 = vadd.f32 %v2143_v0, %v5206_v29  ;;  %v2145_v42 = vpop.f32.mrb[218].mxu1  ;;  %v2498_v4 = vpop.f32.mrb[218].mxu0 }
 0x2ac   : > { %v2495_v55 = vadd.f32 %v2494_v56, %v2142_v41  ;;  %v2146_v6 = vadd.f32 %v2145_v42, %v5192_v21  ;;  %v2147_v33 = vpop.f32.mrb[219].mxu1  ;;  %v2500_v32 = vpop.f32.mrb[219].mxu0 }
 0x2ad   : > { %v2497_v60 = vadd.f32 %v2496_v15, %v2144_v31  ;;  %v2148_v1 = vadd.f32 %v2147_v33, %v5206_v29 }
 0x2ae   : > { %2681 = vst [vmem:[%s5213_s23 + $0x2c0] sm:$0xff] %v2495_v55  ;;  %v2499_v58 = vadd.f32 %v2498_v4, %v2146_v6 }
 0x2af   : > { %2682 = vst [vmem:[%s5213_s23 + $0x2c8] sm:$0xff] %v2497_v60  ;;  %v2501_v47 = vadd.f32 %v2500_v32, %v2148_v1 }
 0x2b0   : > { %2683 = vst [vmem:[%s5213_s23 + $0x2d0] sm:$0xff] %v2499_v58 }
 0x2b1   : > { %2684 = vst [vmem:[%s5213_s23 + $0x2d8] sm:$0xff] %v2501_v47  ;;  %v2151_v16 = vpop.f32.mrb[220].mxu1  ;;  %v2504_v12 = vpop.f32.mrb[220].mxu0 }
 0x2b2   : > { %v2152_v25 = vadd.f32 %v2151_v16, %v5192_v21  ;;  %v2153_v27 = vpop.f32.mrb[221].mxu1  ;;  %v2506_v46 = vpop.f32.mrb[221].mxu0 }
 0x2b3   : > { %v2154_v17 = vadd.f32 %v2153_v27, %v5206_v29  ;;  %v2155_v51 = vpop.f32.mrb[222].mxu1  ;;  %v2508_v2 = vpop.f32.mrb[222].mxu0 }
 0x2b4   : > { %v2505_v35 = vadd.f32 %v2504_v12, %v2152_v25  ;;  %v2156_v28 = vadd.f32 %v2155_v51, %v5192_v21  ;;  %v2157_v50 = vpop.f32.mrb[223].mxu1  ;;  %v2510_v59 = vpop.f32.mrb[223].mxu0 }
 0x2b5   : > { %v2507_v53 = vadd.f32 %v2506_v46, %v2154_v17  ;;  %v2158_v20 = vadd.f32 %v2157_v50, %v5206_v29 }
 0x2b6   : > { %2685 = vst [vmem:[%s5213_s23 + $0x2e0] sm:$0xff] %v2505_v35  ;;  %v2509_v49 = vadd.f32 %v2508_v2, %v2156_v28 }
 0x2b7   : > { %2686 = vst [vmem:[%s5213_s23 + $0x2e8] sm:$0xff] %v2507_v53  ;;  %v2511_v40 = vadd.f32 %v2510_v59, %v2158_v20 }
 0x2b8   : > { %2687 = vst [vmem:[%s5213_s23 + $0x2f0] sm:$0xff] %v2509_v49 }
 0x2b9   : > { %2688 = vst [vmem:[%s5213_s23 + $0x2f8] sm:$0xff] %v2511_v40  ;;  %v2161_v52 = vpop.f32.mrb[224].mxu1  ;;  %v2514_v22 = vpop.f32.mrb[224].mxu0 }
 0x2ba   : > { %v2162_v13 = vadd.f32 %v2161_v52, %v5192_v21  ;;  %v2163_v62 = vpop.f32.mrb[225].mxu1  ;;  %v2516_v8 = vpop.f32.mrb[225].mxu0 }
 0x2bb   : > { %v2164_v24 = vadd.f32 %v2163_v62, %v5206_v29  ;;  %v2165_v7 = vpop.f32.mrb[226].mxu1  ;;  %v2518_v37 = vpop.f32.mrb[226].mxu0 }
 0x2bc   : > { %v2515_v30 = vadd.f32 %v2514_v22, %v2162_v13  ;;  %v2166_v43 = vadd.f32 %v2165_v7, %v5192_v21  ;;  %v2167_v38 = vpop.f32.mrb[227].mxu1  ;;  %v2520_v23 = vpop.f32.mrb[227].mxu0 }
 0x2bd   : > { %v2517_v48 = vadd.f32 %v2516_v8, %v2164_v24  ;;  %v2168_v54 = vadd.f32 %v2167_v38, %v5206_v29 }
 0x2be   : > { %2689 = vst [vmem:[%s5213_s23 + $0x300] sm:$0xff] %v2515_v30  ;;  %v2519_v18 = vadd.f32 %v2518_v37, %v2166_v43 }
 0x2bf   : > { %2690 = vst [vmem:[%s5213_s23 + $0x308] sm:$0xff] %v2517_v48  ;;  %v2521_v63 = vadd.f32 %v2520_v23, %v2168_v54 }
 0x2c0   : > { %2691 = vst [vmem:[%s5213_s23 + $0x310] sm:$0xff] %v2519_v18 }
 0x2c1   : > { %2692 = vst [vmem:[%s5213_s23 + $0x318] sm:$0xff] %v2521_v63  ;;  %v2171_v44 = vpop.f32.mrb[228].mxu1  ;;  %v2524_v9 = vpop.f32.mrb[228].mxu0 }
 0x2c2   : > { %v2172_v11 = vadd.f32 %v2171_v44, %v5192_v21  ;;  %v2173_v39 = vpop.f32.mrb[229].mxu1  ;;  %v2526_v14 = vpop.f32.mrb[229].mxu0 }
 0x2c3   : > { %v2174_v26 = vadd.f32 %v2173_v39, %v5206_v29  ;;  %v2175_v3 = vpop.f32.mrb[230].mxu1  ;;  %v2528_v36 = vpop.f32.mrb[230].mxu0 }
 0x2c4   : > { %v2525_v34 = vadd.f32 %v2524_v9, %v2172_v11  ;;  %v2176_v5 = vadd.f32 %v2175_v3, %v5192_v21  ;;  %v2177_v61 = vpop.f32.mrb[231].mxu1  ;;  %v2530_v19 = vpop.f32.mrb[231].mxu0 }
 0x2c5   : > { %v2527_v10 = vadd.f32 %v2526_v14, %v2174_v26  ;;  %v2178_v57 = vadd.f32 %v2177_v61, %v5206_v29 }
 0x2c6   : > { %2693 = vst [vmem:[%s5213_s23 + $0x320] sm:$0xff] %v2525_v34  ;;  %v2529_v45 = vadd.f32 %v2528_v36, %v2176_v5 }
 0x2c7   : > { %2694 = vst [vmem:[%s5213_s23 + $0x328] sm:$0xff] %v2527_v10  ;;  %v2531_v56 = vadd.f32 %v2530_v19, %v2178_v57 }
 0x2c8   : > { %2695 = vst [vmem:[%s5213_s23 + $0x330] sm:$0xff] %v2529_v45 }
 0x2c9   : > { %2696 = vst [vmem:[%s5213_s23 + $0x338] sm:$0xff] %v2531_v56  ;;  %v2181_v41 = vpop.f32.mrb[232].mxu1  ;;  %v2534_v0 = vpop.f32.mrb[232].mxu0 }
 0x2ca   : > { %v2182_v15 = vadd.f32 %v2181_v41, %v5192_v21  ;;  %v2183_v31 = vpop.f32.mrb[233].mxu1  ;;  %v2536_v42 = vpop.f32.mrb[233].mxu0 }
 0x2cb   : > { %v2184_v4 = vadd.f32 %v2183_v31, %v5206_v29  ;;  %v2185_v55 = vpop.f32.mrb[234].mxu1  ;;  %v2538_v6 = vpop.f32.mrb[234].mxu0 }
 0x2cc   : > { %v2535_v33 = vadd.f32 %v2534_v0, %v2182_v15  ;;  %v2186_v32 = vadd.f32 %v2185_v55, %v5192_v21  ;;  %v2187_v60 = vpop.f32.mrb[235].mxu1  ;;  %v2540_v1 = vpop.f32.mrb[235].mxu0 }
 0x2cd   : > { %v2537_v58 = vadd.f32 %v2536_v42, %v2184_v4  ;;  %v2188_v47 = vadd.f32 %v2187_v60, %v5206_v29 }
 0x2ce   : > { %2697 = vst [vmem:[%s5213_s23 + $0x340] sm:$0xff] %v2535_v33  ;;  %v2539_v16 = vadd.f32 %v2538_v6, %v2186_v32 }
 0x2cf   : > { %2698 = vst [vmem:[%s5213_s23 + $0x348] sm:$0xff] %v2537_v58  ;;  %v2541_v12 = vadd.f32 %v2540_v1, %v2188_v47 }
 0x2d0   : > { %2699 = vst [vmem:[%s5213_s23 + $0x350] sm:$0xff] %v2539_v16 }
 0x2d1   : > { %2700 = vst [vmem:[%s5213_s23 + $0x358] sm:$0xff] %v2541_v12  ;;  %v2191_v25 = vpop.f32.mrb[236].mxu1  ;;  %v2544_v27 = vpop.f32.mrb[236].mxu0 }
 0x2d2   : > { %v2192_v46 = vadd.f32 %v2191_v25, %v5192_v21  ;;  %v2193_v17 = vpop.f32.mrb[237].mxu1  ;;  %v2546_v51 = vpop.f32.mrb[237].mxu0 }
 0x2d3   : > { %v2194_v2 = vadd.f32 %v2193_v17, %v5206_v29  ;;  %v2195_v35 = vpop.f32.mrb[238].mxu1  ;;  %v2548_v28 = vpop.f32.mrb[238].mxu0 }
 0x2d4   : > { %v2545_v50 = vadd.f32 %v2544_v27, %v2192_v46  ;;  %v2196_v59 = vadd.f32 %v2195_v35, %v5192_v21  ;;  %v2197_v53 = vpop.f32.mrb[239].mxu1  ;;  %v2550_v20 = vpop.f32.mrb[239].mxu0 }
 0x2d5   : > { %v2547_v49 = vadd.f32 %v2546_v51, %v2194_v2  ;;  %v2198_v40 = vadd.f32 %v2197_v53, %v5206_v29 }
 0x2d6   : > { %2701 = vst [vmem:[%s5213_s23 + $0x360] sm:$0xff] %v2545_v50  ;;  %v2549_v52 = vadd.f32 %v2548_v28, %v2196_v59 }
 0x2d7   : > { %2702 = vst [vmem:[%s5213_s23 + $0x368] sm:$0xff] %v2547_v49  ;;  %v2551_v22 = vadd.f32 %v2550_v20, %v2198_v40 }
 0x2d8   : > { %2703 = vst [vmem:[%s5213_s23 + $0x370] sm:$0xff] %v2549_v52 }
 0x2d9   : > { %2704 = vst [vmem:[%s5213_s23 + $0x378] sm:$0xff] %v2551_v22  ;;  %v2201_v13 = vpop.f32.mrb[240].mxu1  ;;  %v2554_v62 = vpop.f32.mrb[240].mxu0 }
 0x2da   : > { %v2202_v8 = vadd.f32 %v2201_v13, %v5192_v21  ;;  %v2203_v24 = vpop.f32.mrb[241].mxu1  ;;  %v2556_v7 = vpop.f32.mrb[241].mxu0 }
 0x2db   : > { %v2204_v37 = vadd.f32 %v2203_v24, %v5206_v29  ;;  %v2205_v30 = vpop.f32.mrb[242].mxu1  ;;  %v2558_v43 = vpop.f32.mrb[242].mxu0 }
 0x2dc   : > { %v2555_v38 = vadd.f32 %v2554_v62, %v2202_v8  ;;  %v2206_v23 = vadd.f32 %v2205_v30, %v5192_v21  ;;  %v2207_v48 = vpop.f32.mrb[243].mxu1  ;;  %v2560_v54 = vpop.f32.mrb[243].mxu0 }
 0x2dd   : > { %v2557_v18 = vadd.f32 %v2556_v7, %v2204_v37  ;;  %v2208_v63 = vadd.f32 %v2207_v48, %v5206_v29 }
 0x2de   : > { %2705 = vst [vmem:[%s5213_s23 + $0x380] sm:$0xff] %v2555_v38  ;;  %v2559_v44 = vadd.f32 %v2558_v43, %v2206_v23 }
 0x2df   : > { %2706 = vst [vmem:[%s5213_s23 + $0x388] sm:$0xff] %v2557_v18  ;;  %v2561_v9 = vadd.f32 %v2560_v54, %v2208_v63 }
 0x2e0   : > { %2707 = vst [vmem:[%s5213_s23 + $0x390] sm:$0xff] %v2559_v44 }
 0x2e1   : > { %2708 = vst [vmem:[%s5213_s23 + $0x398] sm:$0xff] %v2561_v9  ;;  %v2211_v11 = vpop.f32.mrb[244].mxu1  ;;  %v2564_v39 = vpop.f32.mrb[244].mxu0 }
 0x2e2   : > { %v2212_v14 = vadd.f32 %v2211_v11, %v5192_v21  ;;  %v2213_v26 = vpop.f32.mrb[245].mxu1  ;;  %v2566_v3 = vpop.f32.mrb[245].mxu0 }
 0x2e3   : > { %v2214_v36 = vadd.f32 %v2213_v26, %v5206_v29  ;;  %v2215_v34 = vpop.f32.mrb[246].mxu1  ;;  %v2568_v5 = vpop.f32.mrb[246].mxu0 }
 0x2e4   : > { %v2565_v61 = vadd.f32 %v2564_v39, %v2212_v14  ;;  %v2216_v19 = vadd.f32 %v2215_v34, %v5192_v21  ;;  %v2217_v10 = vpop.f32.mrb[247].mxu1  ;;  %v2570_v57 = vpop.f32.mrb[247].mxu0 }
 0x2e5   : > { %v2567_v45 = vadd.f32 %v2566_v3, %v2214_v36  ;;  %v2218_v56 = vadd.f32 %v2217_v10, %v5206_v29 }
 0x2e6   : > { %2709 = vst [vmem:[%s5213_s23 + $0x3a0] sm:$0xff] %v2565_v61  ;;  %v2569_v41 = vadd.f32 %v2568_v5, %v2216_v19 }
 0x2e7   : > { %2710 = vst [vmem:[%s5213_s23 + $0x3a8] sm:$0xff] %v2567_v45  ;;  %v2571_v0 = vadd.f32 %v2570_v57, %v2218_v56 }
 0x2e8   : > { %2711 = vst [vmem:[%s5213_s23 + $0x3b0] sm:$0xff] %v2569_v41 }
 0x2e9   : > { %2712 = vst [vmem:[%s5213_s23 + $0x3b8] sm:$0xff] %v2571_v0  ;;  %v2221_v15 = vpop.f32.mrb[248].mxu1  ;;  %v2574_v31 = vpop.f32.mrb[248].mxu0 }
 0x2ea   : > { %v2222_v42 = vadd.f32 %v2221_v15, %v5192_v21  ;;  %v2223_v4 = vpop.f32.mrb[249].mxu1  ;;  %v2576_v55 = vpop.f32.mrb[249].mxu0 }
 0x2eb   : > { %v2224_v6 = vadd.f32 %v2223_v4, %v5206_v29  ;;  %v2225_v33 = vpop.f32.mrb[250].mxu1  ;;  %v2578_v32 = vpop.f32.mrb[250].mxu0 }
 0x2ec   : > { %v2575_v60 = vadd.f32 %v2574_v31, %v2222_v42  ;;  %v2226_v1 = vadd.f32 %v2225_v33, %v5192_v21  ;;  %v2227_v58 = vpop.f32.mrb[251].mxu1  ;;  %v2580_v47 = vpop.f32.mrb[251].mxu0 }
 0x2ed   : > { %v2577_v16 = vadd.f32 %v2576_v55, %v2224_v6  ;;  %v2228_v12 = vadd.f32 %v2227_v58, %v5206_v29 }
 0x2ee   : > { %2713 = vst [vmem:[%s5213_s23 + $0x3c0] sm:$0xff] %v2575_v60  ;;  %v2579_v25 = vadd.f32 %v2578_v32, %v2226_v1 }
 0x2ef   : > { %2714 = vst [vmem:[%s5213_s23 + $0x3c8] sm:$0xff] %v2577_v16  ;;  %v2581_v27 = vadd.f32 %v2580_v47, %v2228_v12 }
 0x2f0   : > { %2715 = vst [vmem:[%s5213_s23 + $0x3d0] sm:$0xff] %v2579_v25 }
 0x2f1   : > { %2716 = vst [vmem:[%s5213_s23 + $0x3d8] sm:$0xff] %v2581_v27  ;;  %v2231_v46 = vpop.f32.mrb[252].mxu1  ;;  %v2584_v17 = vpop.f32.mrb[252].mxu0 }
 0x2f2   : > { %v2232_v51 = vadd.f32 %v2231_v46, %v5192_v21  ;;  %v2233_v2 = vpop.f32.mrb[253].mxu1  ;;  %v2586_v35 = vpop.f32.mrb[253].mxu0 }
 0x2f3   : > { %v2234_v28 = vadd.f32 %v2233_v2, %v5206_v29  ;;  %v2235_v50 = vpop.f32.mrb[254].mxu1  ;;  %v2588_v59 = vpop.f32.mrb[254].mxu0 }
 0x2f4   : > { %v2585_v53 = vadd.f32 %v2584_v17, %v2232_v51  ;;  %v2236_v20 = vadd.f32 %v2235_v50, %v5192_v21  ;;  %v2237_v49 = vpop.f32.mrb[255].mxu1  ;;  %v2590_v40 = vpop.f32.mrb[255].mxu0 }
 0x2f5   : > { %v2587_v52 = vadd.f32 %v2586_v35, %v2234_v28  ;;  %v2238_v22 = vadd.f32 %v2237_v49, %v5206_v29 }
 0x2f6   : > { %2717 = vst [vmem:[%s5213_s23 + $0x3e0] sm:$0xff] %v2585_v53  ;;  %v2589_v13 = vadd.f32 %v2588_v59, %v2236_v20 }
 0x2f7   : > { %2718 = vst [vmem:[%s5213_s23 + $0x3e8] sm:$0xff] %v2587_v52  ;;  %v2591_v62 = vadd.f32 %v2590_v40, %v2238_v22 }
 0x2f8   : > { %2719 = vst [vmem:[%s5213_s23 + $0x3f0] sm:$0xff] %v2589_v13 }
 0x2f9   : > { %2720 = vst [vmem:[%s5213_s23 + $0x3f8] sm:$0xff] %v2591_v62 }
 0x2fa PF: > { %s22_s26 = sadd.s32 1, %s3404_s26  }
 0x2fb   : > { %p19_p11 = scmp.ge.s32.totalorder %s22_s26, 7  }
 0x2fd   :  { %21 = sbr.rel (!%p19_p11) target bundleno = 16 (0x10), region = 76 }

</bundles_post_ra>
